<compile_context>
chip_gen: v7x
topology: tpu7x:2x2x1
jax: 0.10.0
libtpu: 0.0.40
codegen_flags: <defaults>
</compile_context>

<pallas_src>
import math

import jax
import jax.numpy as jnp
from jax.experimental import pallas as pl
from jax.experimental.pallas import tpu as pltpu

_BN_SCALE = 1.0 / float(jnp.sqrt(1.0 + 1e-5))   # eval-mode BatchNorm1d, default stats
_MATMUL_DTYPE = jnp.bfloat16                    # MXU-native; f32 accumulation keeps numerics close

_STACK_KEYS = ("w1", "att1", "b1", "wb", "attb", "bb",
               "wmu", "attmu", "bmu", "wvar", "attvar", "bvar")


# ----------------------------------------------------------------------------
# In-kernel graph-conv stack (activation resident as (N, nb*F), f32)
# ----------------------------------------------------------------------------
def _gc_layer(y, w, att, b):
    """GraphConvolution + eval-BN (folded into att/b) + tanh, batch-blocked."""
    s = jnp.dot(y.astype(w.dtype), w, preferred_element_type=jnp.float32)        # (N, nb*Fout)
    t = jnp.dot(att, s.astype(att.dtype), preferred_element_type=jnp.float32)    # (N, nb*Fout)
    return jnp.tanh(t + b)


def _gc_head(y, w, att, b):
    """GraphConvolution head (no BN / activation)."""
    s = jnp.dot(y.astype(w.dtype), w, preferred_element_type=jnp.float32)
    return jnp.dot(att, s.astype(att.dtype), preferred_element_type=jnp.float32) + b


def _gc_stack(y, refs):
    """gc1 -> num_stage residual GC_Blocks -> (mu head, var head)."""
    (w1, att1, b1, wb, attb, bb, wmu, attmu, bmu, wvar, attvar, bvar) = refs
    y = _gc_layer(y, w1[...], att1[...], b1[...])
    num_layers = wb.shape[0]                      # 2 * num_stage
    for blk in range(num_layers // 2):
        y_in = y
        for l in (2 * blk, 2 * blk + 1):
            y = _gc_layer(y, wb[l], attb[l], bb[l])
        y = y + y_in                              # residual around each GC_Block
    mu = _gc_head(y, wmu[...], attmu[...], bmu[...])
    var = _gc_head(y, wvar[...], attvar[...], bvar[...])
    return mu, var


def _vgae_kernel(*refs):
    x_ref, eps_ref = refs[0], refs[1]
    enc_refs = refs[2:14]
    dec_refs = refs[14:26]
    z_ref, mu_ref, lv_ref, kl_ref = refs[26:30]

    # Encoder stack -> (mu_e, log_var_e) in the lane-dense (N, nb*nz) layout.
    mu_e, lv_e = _gc_stack(x_ref[...], enc_refs)

    # Reparameterization (Dropout = identity at inference).
    z = mu_e + eps_ref[...] * jnp.exp(0.5 * lv_e)
    z_ref[...] = z.astype(z_ref.dtype)

    # KL(q(z|x) || N(0,I)) summed over this block's samples/nodes/latent dims.
    kl_ref[...] = (-0.5 * jnp.sum(1.0 + lv_e - mu_e * mu_e - jnp.exp(lv_e))).reshape(1, 1)

    # Decoder consumes z straight from vregs/VMEM (no HBM round trip).
    mu_d, lv_d = _gc_stack(z, dec_refs)
    mu_ref[...] = mu_d.astype(mu_ref.dtype)
    lv_ref[...] = lv_d.astype(lv_ref.dtype)


# ----------------------------------------------------------------------------
# Parameter init (mirrors GraphConvolution.reset_parameters)
# ----------------------------------------------------------------------------
def _init_gc(key, fin, fout, node_n):
    k1, k2, k3 = jax.random.split(key, 3)
    stdv = 1.0 / jnp.sqrt(jnp.asarray(fout, jnp.float32))
    w = jax.random.uniform(k1, (fin, fout), jnp.float32, -stdv, stdv)
    att = jax.random.uniform(k2, (node_n, node_n), jnp.float32, -stdv, stdv)
    b = jax.random.uniform(k3, (fout,), jnp.float32, -stdv, stdv)
    return w, att, b


def init_stack_params(key, fin, hid, fout, num_stage, node_n):
    L = 2 * num_stage
    k1, kb, kmu, kvar = jax.random.split(key, 4)
    w1, att1, b1 = _init_gc(k1, fin, hid, node_n)
    blk = [_init_gc(k, hid, hid, node_n) for k in jax.random.split(kb, L)]
    w_mu, att_mu, b_mu = _init_gc(kmu, hid, fout, node_n)
    w_var, att_var, b_var = _init_gc(kvar, hid, fout, node_n)
    return {
        "w1": w1, "att1": att1, "b1": b1,
        "wb": jnp.stack([w for w, _, _ in blk]),
        "attb": jnp.stack([a for _, a, _ in blk]),
        "bb": jnp.stack([b for _, _, b in blk]),
        "w_mu": w_mu, "att_mu": att_mu, "b_mu": b_mu,
        "w_var": w_var, "att_var": att_var, "b_var": b_var,
    }


def init_vgae_params(key, input_feature, hidden_feature, num_stage, node_n, n_z):
    k_enc, k_dec = jax.random.split(key)
    return {
        "enc": init_stack_params(k_enc, input_feature, hidden_feature, n_z, num_stage, node_n),
        "dec": init_stack_params(k_dec, n_z, hidden_feature, input_feature, num_stage, node_n),
    }


# ----------------------------------------------------------------------------
# Packing: block-diagonal weights, BN fold, bias tiling, bf16 cast
# ----------------------------------------------------------------------------
def _block_diag(w, nb):
    """(fin, fout) -> (nb*fin, nb*fout) with w repeated on the block diagonal."""
    fin, fout = w.shape
    eye = jnp.eye(nb, dtype=w.dtype)
    return (eye[:, None, :, None] * w[None, :, None, :]).reshape(nb * fin, nb * fout)


def _block_diag_stacked(w, nb):
    """(L, fin, fout) -> (L, nb*fin, nb*fout)."""
    L, fin, fout = w.shape
    eye = jnp.eye(nb, dtype=w.dtype)
    return (eye[None, :, None, :, None] * w[:, None, :, None, :]).reshape(L, nb * fin, nb * fout)


def _pack_stack(p, nb, mm_dtype):
    s = _BN_SCALE   # eval-mode BatchNorm fold (only layers followed by bn+tanh)
    return {
        "w1": _block_diag(p["w1"], nb).astype(mm_dtype),
        "att1": (s * p["att1"]).astype(mm_dtype),
        "b1": (s * jnp.tile(p["b1"], nb)).reshape(1, -1).astype(jnp.float32),
        "wb": _block_diag_stacked(p["wb"], nb).astype(mm_dtype),
        "attb": (s * p["attb"]).astype(mm_dtype),
        "bb": (s * jnp.tile(p["bb"], (1, nb)))[:, None, :].astype(jnp.float32),
        "wmu": _block_diag(p["w_mu"], nb).astype(mm_dtype),
        "attmu": p["att_mu"].astype(mm_dtype),
        "bmu": jnp.tile(p["b_mu"], nb).reshape(1, -1).astype(jnp.float32),
        "wvar": _block_diag(p["w_var"], nb).astype(mm_dtype),
        "attvar": p["att_var"].astype(mm_dtype),
        "bvar": jnp.tile(p["b_var"], nb).reshape(1, -1).astype(jnp.float32),
    }


def _choose_batch_block(B, min_feat):
    """Largest divisor of B that pushes lane width toward 128; keep >=2 grid
    steps (both v7x TensorCores) when the batch is big enough to split."""
    target = max(1, 128 // max(1, min_feat))
    cand = [d for d in range(1, B + 1) if B % d == 0 and d <= target]
    nb = max(cand) if cand else 1
    if B // nb < 2 and B >= 4:
        cand2 = [d for d in cand if B // d >= 2]
        if cand2:
            nb = max(cand2)
    return nb


def _cost_estimate(G, N, nb, fin, hid, L, nz, in_arrays, out_shapes):
    mm = lambda m, k, n: 2 * m * k * n

    def stack_flops(fi, fo):
        fl = mm(N, nb * fi, nb * hid) + mm(N, N, nb * hid)
        fl += L * (mm(N, nb * hid, nb * hid) + mm(N, N, nb * hid))
        fl += 2 * (mm(N, nb * hid, nb * fo) + mm(N, N, nb * fo))
        return fl

    flops = G * (stack_flops(fin, nz) + stack_flops(nz, fin))
    trans = G * (2 * (1 + L) * N * nb * hid + 3 * N * nb * nz)   # tanh + exp
    nbytes = lambda shape, dtype: math.prod(shape) * jnp.dtype(dtype).itemsize
    bytes_acc = sum(nbytes(a.shape, a.dtype) for a in in_arrays)
    bytes_acc += sum(nbytes(s.shape, s.dtype) for s in out_shapes)
    return int(flops), int(trans), int(bytes_acc)


# ----------------------------------------------------------------------------
# Fused forward: encoder -> reparam/KL -> decoder, one pallas_call
# ----------------------------------------------------------------------------
def vgae_forward(params, x, eps, *, batch_block=None, matmul_dtype=_MATMUL_DTYPE):
    """Returns (mu, log_var, z) like VGAE.forward, plus the encoder KL."""
    B, N, fin = x.shape
    nz = eps.shape[-1]
    hid = params["enc"]["w1"].shape[1]
    L = params["enc"]["wb"].shape[0]

    nb = _choose_batch_block(B, min(fin, hid, nz)) if batch_block is None else batch_block
    assert B % nb == 0, "batch must be divisible by the batch block"
    G = B // nb

    # Lane-dense batch blocking: (B, N, F) -> (G, N, nb*F), sample index slower
    # than feature inside the lane dimension (matches the block-diag weights).
    def to_blocks(a):
        F = a.shape[-1]
        return a.reshape(G, nb, N, F).transpose(0, 2, 1, 3).reshape(G, N, nb * F)

    def from_blocks(a, F):
        return a.reshape(G, N, nb, F).transpose(0, 2, 1, 3).reshape(B, N, F)

    xb, epsb = to_blocks(x), to_blocks(eps)
    enc = _pack_stack(params["enc"], nb, matmul_dtype)
    dec = _pack_stack(params["dec"], nb, matmul_dtype)
    weight_args = [enc[k] for k in _STACK_KEYS] + [dec[k] for k in _STACK_KEYS]

    def const_spec(a):                      # whole array, same block every step
        nd = a.ndim
        return pl.BlockSpec(a.shape, lambda g, _nd=nd: (0,) * _nd)

    def blk_spec(F):                        # one batch block per grid step
        return pl.BlockSpec((pl.Squeezed(), N, F), lambda g: (g, 0, 0))

    in_specs = ([blk_spec(nb * fin), blk_spec(nb * nz)]
                + [const_spec(a) for a in weight_args])

    out_shape = (
        jax.ShapeDtypeStruct((G, N, nb * nz), x.dtype),     # z (block layout)
        jax.ShapeDtypeStruct((G, N, nb * fin), x.dtype),    # decoder mu
        jax.ShapeDtypeStruct((G, N, nb * fin), x.dtype),    # decoder log_var
        jax.ShapeDtypeStruct((G, 1, 1), jnp.float32),       # per-block KL sum
    )
    out_specs = (
        blk_spec(nb * nz), blk_spec(nb * fin), blk_spec(nb * fin),
        pl.BlockSpec((pl.Squeezed(), 1, 1), lambda g: (g, 0, 0)),
    )

    flops, trans, bytes_acc = _cost_estimate(
        G, N, nb, fin, hid, L, nz, [xb, epsb] + weight_args, out_shape)

    zb, mub, lvb, kl_b = pl.pallas_call(
        _vgae_kernel,
        out_shape=out_shape,
        grid_spec=pltpu.PrefetchScalarGridSpec(
            num_scalar_prefetch=0,
            grid=(G,),
            in_specs=in_specs,
            out_specs=out_specs,
        ),
        compiler_params=pltpu.CompilerParams(dimension_semantics=("parallel",)),
        cost_estimate=pl.CostEstimate(flops=flops, transcendentals=trans,
                                      bytes_accessed=bytes_acc),
    )(xb, epsb, *weight_args)

    z = from_blocks(zb, nz)
    mu = from_blocks(mub, fin)
    log_var = from_blocks(lvb, fin)
    KL = jnp.sum(kl_b) / B                 # mean over batch of per-sample KL sums
    # TODO(synk): the `hybrid=True` branch of the reference repo is not part of
    # the provided source; the pure VGAE path is implemented here.
    return mu, log_var, z, KL


# ----------------------------------------------------------------------------
if __name__ == "__main__":
    B = 2
    node_n = 48
    input_feature = 16
    hidden_feature = 32
    n_z = 16
    num_stage = 2          # small stack for the demo (module default is 6)

    root = jax.random.PRNGKey(0)
    k_param, k_x, k_eps = jax.random.split(root, 3)

    params = init_vgae_params(k_param, input_feature, hidden_feature,
                              num_stage, node_n, n_z)
    x = jax.random.normal(k_x, (B, node_n, input_feature), jnp.float32)
    eps = jax.random.normal(k_eps, (B, node_n, n_z), jnp.float32)   # reparam noise

    fwd = jax.jit(vgae_forward)
    mu, log_var, z, KL = fwd(params, x, eps)
    jax.block_until_ready((mu, log_var, z, KL))

    assert mu.shape == (B, node_n, input_feature)
    assert log_var.shape == (B, node_n, input_feature)
    assert z.shape == (B, node_n, n_z)
    assert KL.shape == ()
    assert bool(jnp.all(jnp.isfinite(mu))) and bool(jnp.all(jnp.isfinite(log_var)))
    assert bool(jnp.all(jnp.isfinite(z))) and bool(jnp.isfinite(KL))
    print("KERNEL_OK")
</pallas_src>

<mosaic_0001>
module attributes {stable_mosaic.version = 11 : i64} {
  func.func @_vgae_kernel(%arg0: i32, %arg1: memref<1x48x32xf32, #tpu.memory_space<vmem>>, %arg2: memref<1x48x32xf32, #tpu.memory_space<vmem>>, %arg3: memref<32x64xbf16, #tpu.memory_space<vmem>>, %arg4: memref<48x48xbf16, #tpu.memory_space<vmem>>, %arg5: memref<1x64xf32, #tpu.memory_space<vmem>>, %arg6: memref<4x64x64xbf16, #tpu.memory_space<vmem>>, %arg7: memref<4x48x48xbf16, #tpu.memory_space<vmem>>, %arg8: memref<4x1x64xf32, #tpu.memory_space<vmem>>, %arg9: memref<64x32xbf16, #tpu.memory_space<vmem>>, %arg10: memref<48x48xbf16, #tpu.memory_space<vmem>>, %arg11: memref<1x32xf32, #tpu.memory_space<vmem>>, %arg12: memref<64x32xbf16, #tpu.memory_space<vmem>>, %arg13: memref<48x48xbf16, #tpu.memory_space<vmem>>, %arg14: memref<1x32xf32, #tpu.memory_space<vmem>>, %arg15: memref<32x64xbf16, #tpu.memory_space<vmem>>, %arg16: memref<48x48xbf16, #tpu.memory_space<vmem>>, %arg17: memref<1x64xf32, #tpu.memory_space<vmem>>, %arg18: memref<4x64x64xbf16, #tpu.memory_space<vmem>>, %arg19: memref<4x48x48xbf16, #tpu.memory_space<vmem>>, %arg20: memref<4x1x64xf32, #tpu.memory_space<vmem>>, %arg21: memref<64x32xbf16, #tpu.memory_space<vmem>>, %arg22: memref<48x48xbf16, #tpu.memory_space<vmem>>, %arg23: memref<1x32xf32, #tpu.memory_space<vmem>>, %arg24: memref<64x32xbf16, #tpu.memory_space<vmem>>, %arg25: memref<48x48xbf16, #tpu.memory_space<vmem>>, %arg26: memref<1x32xf32, #tpu.memory_space<vmem>>, %arg27: memref<1x48x32xf32, #tpu.memory_space<vmem>>, %arg28: memref<1x48x32xf32, #tpu.memory_space<vmem>>, %arg29: memref<1x48x32xf32, #tpu.memory_space<vmem>>, %arg30: memref<1x1x1xf32, #tpu.memory_space<vmem>>) attributes {dimension_semantics = [#tpu.dimension_semantics<parallel>], iteration_bounds = array<i64: 1>, scalar_prefetch = 0 : i64, scratch_operands = 0 : i64, tpu.core_type = #tpu.core_type<tc>, window_params = [{transform_indices = @transform_0, window_bounds = array<i64: 1, 48, 32>}, {transform_indices = @transform_1, window_bounds = array<i64: 1, 48, 32>}, {pipeline_mode = #tpu.pipeline_mode<synchronous>, transform_indices = @transform_2, window_bounds = array<i64: 32, 64>}, {pipeline_mode = #tpu.pipeline_mode<synchronous>, transform_indices = @transform_3, window_bounds = array<i64: 48, 48>}, {pipeline_mode = #tpu.pipeline_mode<synchronous>, transform_indices = @transform_4, window_bounds = array<i64: 1, 64>}, {pipeline_mode = #tpu.pipeline_mode<synchronous>, transform_indices = @transform_5, window_bounds = array<i64: 4, 64, 64>}, {pipeline_mode = #tpu.pipeline_mode<synchronous>, transform_indices = @transform_6, window_bounds = array<i64: 4, 48, 48>}, {pipeline_mode = #tpu.pipeline_mode<synchronous>, transform_indices = @transform_7, window_bounds = array<i64: 4, 1, 64>}, {pipeline_mode = #tpu.pipeline_mode<synchronous>, transform_indices = @transform_8, window_bounds = array<i64: 64, 32>}, {pipeline_mode = #tpu.pipeline_mode<synchronous>, transform_indices = @transform_9, window_bounds = array<i64: 48, 48>}, {pipeline_mode = #tpu.pipeline_mode<synchronous>, transform_indices = @transform_10, window_bounds = array<i64: 1, 32>}, {pipeline_mode = #tpu.pipeline_mode<synchronous>, transform_indices = @transform_11, window_bounds = array<i64: 64, 32>}, {pipeline_mode = #tpu.pipeline_mode<synchronous>, transform_indices = @transform_12, window_bounds = array<i64: 48, 48>}, {pipeline_mode = #tpu.pipeline_mode<synchronous>, transform_indices = @transform_13, window_bounds = array<i64: 1, 32>}, {pipeline_mode = #tpu.pipeline_mode<synchronous>, transform_indices = @transform_14, window_bounds = array<i64: 32, 64>}, {pipeline_mode = #tpu.pipeline_mode<synchronous>, transform_indices = @transform_15, window_bounds = array<i64: 48, 48>}, {pipeline_mode = #tpu.pipeline_mode<synchronous>, transform_indices = @transform_16, window_bounds = array<i64: 1, 64>}, {pipeline_mode = #tpu.pipeline_mode<synchronous>, transform_indices = @transform_17, window_bounds = array<i64: 4, 64, 64>}, {pipeline_mode = #tpu.pipeline_mode<synchronous>, transform_indices = @transform_18, window_bounds = array<i64: 4, 48, 48>}, {pipeline_mode = #tpu.pipeline_mode<synchronous>, transform_indices = @transform_19, window_bounds = array<i64: 4, 1, 64>}, {pipeline_mode = #tpu.pipeline_mode<synchronous>, transform_indices = @transform_20, window_bounds = array<i64: 64, 32>}, {pipeline_mode = #tpu.pipeline_mode<synchronous>, transform_indices = @transform_21, window_bounds = array<i64: 48, 48>}, {pipeline_mode = #tpu.pipeline_mode<synchronous>, transform_indices = @transform_22, window_bounds = array<i64: 1, 32>}, {pipeline_mode = #tpu.pipeline_mode<synchronous>, transform_indices = @transform_23, window_bounds = array<i64: 64, 32>}, {pipeline_mode = #tpu.pipeline_mode<synchronous>, transform_indices = @transform_24, window_bounds = array<i64: 48, 48>}, {pipeline_mode = #tpu.pipeline_mode<synchronous>, transform_indices = @transform_25, window_bounds = array<i64: 1, 32>}, {transform_indices = @transform_26, window_bounds = array<i64: 1, 48, 32>}, {transform_indices = @transform_27, window_bounds = array<i64: 1, 48, 32>}, {transform_indices = @transform_28, window_bounds = array<i64: 1, 48, 32>}, {transform_indices = @transform_29, window_bounds = array<i64: 1, 1, 1>}]} {
    %c0 = arith.constant 0 : index
    %c0_0 = arith.constant 0 : index
    %c0_1 = arith.constant 0 : index
    %0 = vector.load %arg1[%c0, %c0_0, %c0_1] : memref<1x48x32xf32, #tpu.memory_space<vmem>>, vector<1x48x32xf32>
    %1 = vector.shape_cast %0 : vector<1x48x32xf32> to vector<48x32xf32>
    %c0_2 = arith.constant 0 : index
    %c0_3 = arith.constant 0 : index
    %2 = vector.load %arg3[%c0_2, %c0_3] : memref<32x64xbf16, #tpu.memory_space<vmem>>, vector<32x64xbf16>
    %c0_4 = arith.constant 0 : index
    %c0_5 = arith.constant 0 : index
    %3 = vector.load %arg4[%c0_4, %c0_5] : memref<48x48xbf16, #tpu.memory_space<vmem>>, vector<48x48xbf16>
    %c0_6 = arith.constant 0 : index
    %c0_7 = arith.constant 0 : index
    %4 = vector.load %arg5[%c0_6, %c0_7] : memref<1x64xf32, #tpu.memory_space<vmem>>, vector<1x64xf32>
    %5 = arith.truncf %1 : vector<48x32xf32> to vector<48x32xbf16>
    %cst = arith.constant dense<0.000000e+00> : vector<48x64xf32>
    %6 = tpu.matmul %5, %2, %cst {dimension_numbers = #tpu.dot_dimension_numbers<[1], [0], [0], [1], [0, 0, 1, 1], [], []>} : vector<48x32xbf16>, vector<32x64xbf16>, vector<48x64xf32> -> vector<48x64xf32>
    %7 = arith.truncf %6 : vector<48x64xf32> to vector<48x64xbf16>
    %cst_8 = arith.constant dense<0.000000e+00> : vector<48x64xf32>
    %8 = tpu.matmul %3, %7, %cst_8 {dimension_numbers = #tpu.dot_dimension_numbers<[1], [0], [0], [1], [0, 0, 1, 1], [], []>} : vector<48x48xbf16>, vector<48x64xbf16>, vector<48x64xf32> -> vector<48x64xf32>
    %9 = vector.broadcast %4 : vector<1x64xf32> to vector<48x64xf32>
    %10 = arith.addf %8, %9 : vector<48x64xf32>
    %11 = math.tanh %10 : vector<48x64xf32>
    %c0_9 = arith.constant 0 : index
    %c0_10 = arith.constant 0 : index
    %c0_11 = arith.constant 0 : index
    %12 = vector.load %arg6[%c0_9, %c0_10, %c0_11] : memref<4x64x64xbf16, #tpu.memory_space<vmem>>, vector<1x64x64xbf16>
    %13 = vector.shape_cast %12 : vector<1x64x64xbf16> to vector<64x64xbf16>
    %c0_12 = arith.constant 0 : index
    %c0_13 = arith.constant 0 : index
    %c0_14 = arith.constant 0 : index
    %14 = vector.load %arg7[%c0_12, %c0_13, %c0_14] : memref<4x48x48xbf16, #tpu.memory_space<vmem>>, vector<1x48x48xbf16>
    %15 = vector.shape_cast %14 : vector<1x48x48xbf16> to vector<48x48xbf16>
    %c0_15 = arith.constant 0 : index
    %c0_16 = arith.constant 0 : index
    %c0_17 = arith.constant 0 : index
    %16 = vector.load %arg8[%c0_15, %c0_16, %c0_17] : memref<4x1x64xf32, #tpu.memory_space<vmem>>, vector<1x1x64xf32>
    %17 = vector.shape_cast %16 : vector<1x1x64xf32> to vector<1x64xf32>
    %18 = arith.truncf %11 : vector<48x64xf32> to vector<48x64xbf16>
    %cst_18 = arith.constant dense<0.000000e+00> : vector<48x64xf32>
    %19 = tpu.matmul %18, %13, %cst_18 {dimension_numbers = #tpu.dot_dimension_numbers<[1], [0], [0], [1], [0, 0, 1, 1], [], []>} : vector<48x64xbf16>, vector<64x64xbf16>, vector<48x64xf32> -> vector<48x64xf32>
    %20 = arith.truncf %19 : vector<48x64xf32> to vector<48x64xbf16>
    %cst_19 = arith.constant dense<0.000000e+00> : vector<48x64xf32>
    %21 = tpu.matmul %15, %20, %cst_19 {dimension_numbers = #tpu.dot_dimension_numbers<[1], [0], [0], [1], [0, 0, 1, 1], [], []>} : vector<48x48xbf16>, vector<48x64xbf16>, vector<48x64xf32> -> vector<48x64xf32>
    %22 = vector.broadcast %17 : vector<1x64xf32> to vector<48x64xf32>
    %23 = arith.addf %21, %22 : vector<48x64xf32>
    %24 = math.tanh %23 : vector<48x64xf32>
    %c1 = arith.constant 1 : index
    %c0_20 = arith.constant 0 : index
    %c0_21 = arith.constant 0 : index
    %25 = vector.load %arg6[%c1, %c0_20, %c0_21] : memref<4x64x64xbf16, #tpu.memory_space<vmem>>, vector<1x64x64xbf16>
    %26 = vector.shape_cast %25 : vector<1x64x64xbf16> to vector<64x64xbf16>
    %c1_22 = arith.constant 1 : index
    %c0_23 = arith.constant 0 : index
    %c0_24 = arith.constant 0 : index
    %27 = vector.load %arg7[%c1_22, %c0_23, %c0_24] : memref<4x48x48xbf16, #tpu.memory_space<vmem>>, vector<1x48x48xbf16>
    %28 = vector.shape_cast %27 : vector<1x48x48xbf16> to vector<48x48xbf16>
    %c1_25 = arith.constant 1 : index
    %c0_26 = arith.constant 0 : index
    %c0_27 = arith.constant 0 : index
    %29 = vector.load %arg8[%c1_25, %c0_26, %c0_27] : memref<4x1x64xf32, #tpu.memory_space<vmem>>, vector<1x1x64xf32>
    %30 = vector.shape_cast %29 : vector<1x1x64xf32> to vector<1x64xf32>
    %31 = arith.truncf %24 : vector<48x64xf32> to vector<48x64xbf16>
    %cst_28 = arith.constant dense<0.000000e+00> : vector<48x64xf32>
    %32 = tpu.matmul %31, %26, %cst_28 {dimension_numbers = #tpu.dot_dimension_numbers<[1], [0], [0], [1], [0, 0, 1, 1], [], []>} : vector<48x64xbf16>, vector<64x64xbf16>, vector<48x64xf32> -> vector<48x64xf32>
    %33 = arith.truncf %32 : vector<48x64xf32> to vector<48x64xbf16>
    %cst_29 = arith.constant dense<0.000000e+00> : vector<48x64xf32>
    %34 = tpu.matmul %28, %33, %cst_29 {dimension_numbers = #tpu.dot_dimension_numbers<[1], [0], [0], [1], [0, 0, 1, 1], [], []>} : vector<48x48xbf16>, vector<48x64xbf16>, vector<48x64xf32> -> vector<48x64xf32>
    %35 = vector.broadcast %30 : vector<1x64xf32> to vector<48x64xf32>
    %36 = arith.addf %34, %35 : vector<48x64xf32>
    %37 = math.tanh %36 : vector<48x64xf32>
    %38 = arith.addf %37, %11 : vector<48x64xf32>
    %c2 = arith.constant 2 : index
    %c0_30 = arith.constant 0 : index
    %c0_31 = arith.constant 0 : index
    %39 = vector.load %arg6[%c2, %c0_30, %c0_31] : memref<4x64x64xbf16, #tpu.memory_space<vmem>>, vector<1x64x64xbf16>
    %40 = vector.shape_cast %39 : vector<1x64x64xbf16> to vector<64x64xbf16>
    %c2_32 = arith.constant 2 : index
    %c0_33 = arith.constant 0 : index
    %c0_34 = arith.constant 0 : index
    %41 = vector.load %arg7[%c2_32, %c0_33, %c0_34] : memref<4x48x48xbf16, #tpu.memory_space<vmem>>, vector<1x48x48xbf16>
    %42 = vector.shape_cast %41 : vector<1x48x48xbf16> to vector<48x48xbf16>
    %c2_35 = arith.constant 2 : index
    %c0_36 = arith.constant 0 : index
    %c0_37 = arith.constant 0 : index
    %43 = vector.load %arg8[%c2_35, %c0_36, %c0_37] : memref<4x1x64xf32, #tpu.memory_space<vmem>>, vector<1x1x64xf32>
    %44 = vector.shape_cast %43 : vector<1x1x64xf32> to vector<1x64xf32>
    %45 = arith.truncf %38 : vector<48x64xf32> to vector<48x64xbf16>
    %cst_38 = arith.constant dense<0.000000e+00> : vector<48x64xf32>
    %46 = tpu.matmul %45, %40, %cst_38 {dimension_numbers = #tpu.dot_dimension_numbers<[1], [0], [0], [1], [0, 0, 1, 1], [], []>} : vector<48x64xbf16>, vector<64x64xbf16>, vector<48x64xf32> -> vector<48x64xf32>
    %47 = arith.truncf %46 : vector<48x64xf32> to vector<48x64xbf16>
    %cst_39 = arith.constant dense<0.000000e+00> : vector<48x64xf32>
    %48 = tpu.matmul %42, %47, %cst_39 {dimension_numbers = #tpu.dot_dimension_numbers<[1], [0], [0], [1], [0, 0, 1, 1], [], []>} : vector<48x48xbf16>, vector<48x64xbf16>, vector<48x64xf32> -> vector<48x64xf32>
    %49 = vector.broadcast %44 : vector<1x64xf32> to vector<48x64xf32>
    %50 = arith.addf %48, %49 : vector<48x64xf32>
    %51 = math.tanh %50 : vector<48x64xf32>
    %c3 = arith.constant 3 : index
    %c0_40 = arith.constant 0 : index
    %c0_41 = arith.constant 0 : index
    %52 = vector.load %arg6[%c3, %c0_40, %c0_41] : memref<4x64x64xbf16, #tpu.memory_space<vmem>>, vector<1x64x64xbf16>
    %53 = vector.shape_cast %52 : vector<1x64x64xbf16> to vector<64x64xbf16>
    %c3_42 = arith.constant 3 : index
    %c0_43 = arith.constant 0 : index
    %c0_44 = arith.constant 0 : index
    %54 = vector.load %arg7[%c3_42, %c0_43, %c0_44] : memref<4x48x48xbf16, #tpu.memory_space<vmem>>, vector<1x48x48xbf16>
    %55 = vector.shape_cast %54 : vector<1x48x48xbf16> to vector<48x48xbf16>
    %c3_45 = arith.constant 3 : index
    %c0_46 = arith.constant 0 : index
    %c0_47 = arith.constant 0 : index
    %56 = vector.load %arg8[%c3_45, %c0_46, %c0_47] : memref<4x1x64xf32, #tpu.memory_space<vmem>>, vector<1x1x64xf32>
    %57 = vector.shape_cast %56 : vector<1x1x64xf32> to vector<1x64xf32>
    %58 = arith.truncf %51 : vector<48x64xf32> to vector<48x64xbf16>
    %cst_48 = arith.constant dense<0.000000e+00> : vector<48x64xf32>
    %59 = tpu.matmul %58, %53, %cst_48 {dimension_numbers = #tpu.dot_dimension_numbers<[1], [0], [0], [1], [0, 0, 1, 1], [], []>} : vector<48x64xbf16>, vector<64x64xbf16>, vector<48x64xf32> -> vector<48x64xf32>
    %60 = arith.truncf %59 : vector<48x64xf32> to vector<48x64xbf16>
    %cst_49 = arith.constant dense<0.000000e+00> : vector<48x64xf32>
    %61 = tpu.matmul %55, %60, %cst_49 {dimension_numbers = #tpu.dot_dimension_numbers<[1], [0], [0], [1], [0, 0, 1, 1], [], []>} : vector<48x48xbf16>, vector<48x64xbf16>, vector<48x64xf32> -> vector<48x64xf32>
    %62 = vector.broadcast %57 : vector<1x64xf32> to vector<48x64xf32>
    %63 = arith.addf %61, %62 : vector<48x64xf32>
    %64 = math.tanh %63 : vector<48x64xf32>
    %65 = arith.addf %64, %38 : vector<48x64xf32>
    %c0_50 = arith.constant 0 : index
    %c0_51 = arith.constant 0 : index
    %66 = vector.load %arg9[%c0_50, %c0_51] : memref<64x32xbf16, #tpu.memory_space<vmem>>, vector<64x32xbf16>
    %c0_52 = arith.constant 0 : index
    %c0_53 = arith.constant 0 : index
    %67 = vector.load %arg10[%c0_52, %c0_53] : memref<48x48xbf16, #tpu.memory_space<vmem>>, vector<48x48xbf16>
    %c0_54 = arith.constant 0 : index
    %c0_55 = arith.constant 0 : index
    %68 = vector.load %arg11[%c0_54, %c0_55] : memref<1x32xf32, #tpu.memory_space<vmem>>, vector<1x32xf32>
    %69 = arith.truncf %65 : vector<48x64xf32> to vector<48x64xbf16>
    %cst_56 = arith.constant dense<0.000000e+00> : vector<48x32xf32>
    %70 = tpu.matmul %69, %66, %cst_56 {dimension_numbers = #tpu.dot_dimension_numbers<[1], [0], [0], [1], [0, 0, 1, 1], [], []>} : vector<48x64xbf16>, vector<64x32xbf16>, vector<48x32xf32> -> vector<48x32xf32>
    %71 = arith.truncf %70 : vector<48x32xf32> to vector<48x32xbf16>
    %cst_57 = arith.constant dense<0.000000e+00> : vector<48x32xf32>
    %72 = tpu.matmul %67, %71, %cst_57 {dimension_numbers = #tpu.dot_dimension_numbers<[1], [0], [0], [1], [0, 0, 1, 1], [], []>} : vector<48x48xbf16>, vector<48x32xbf16>, vector<48x32xf32> -> vector<48x32xf32>
    %73 = vector.broadcast %68 : vector<1x32xf32> to vector<48x32xf32>
    %74 = arith.addf %72, %73 : vector<48x32xf32>
    %c0_58 = arith.constant 0 : index
    %c0_59 = arith.constant 0 : index
    %75 = vector.load %arg12[%c0_58, %c0_59] : memref<64x32xbf16, #tpu.memory_space<vmem>>, vector<64x32xbf16>
    %c0_60 = arith.constant 0 : index
    %c0_61 = arith.constant 0 : index
    %76 = vector.load %arg13[%c0_60, %c0_61] : memref<48x48xbf16, #tpu.memory_space<vmem>>, vector<48x48xbf16>
    %c0_62 = arith.constant 0 : index
    %c0_63 = arith.constant 0 : index
    %77 = vector.load %arg14[%c0_62, %c0_63] : memref<1x32xf32, #tpu.memory_space<vmem>>, vector<1x32xf32>
    %78 = arith.truncf %65 : vector<48x64xf32> to vector<48x64xbf16>
    %cst_64 = arith.constant dense<0.000000e+00> : vector<48x32xf32>
    %79 = tpu.matmul %78, %75, %cst_64 {dimension_numbers = #tpu.dot_dimension_numbers<[1], [0], [0], [1], [0, 0, 1, 1], [], []>} : vector<48x64xbf16>, vector<64x32xbf16>, vector<48x32xf32> -> vector<48x32xf32>
    %80 = arith.truncf %79 : vector<48x32xf32> to vector<48x32xbf16>
    %cst_65 = arith.constant dense<0.000000e+00> : vector<48x32xf32>
    %81 = tpu.matmul %76, %80, %cst_65 {dimension_numbers = #tpu.dot_dimension_numbers<[1], [0], [0], [1], [0, 0, 1, 1], [], []>} : vector<48x48xbf16>, vector<48x32xbf16>, vector<48x32xf32> -> vector<48x32xf32>
    %82 = vector.broadcast %77 : vector<1x32xf32> to vector<48x32xf32>
    %83 = arith.addf %81, %82 : vector<48x32xf32>
    %c0_66 = arith.constant 0 : index
    %c0_67 = arith.constant 0 : index
    %c0_68 = arith.constant 0 : index
    %84 = vector.load %arg2[%c0_66, %c0_67, %c0_68] : memref<1x48x32xf32, #tpu.memory_space<vmem>>, vector<1x48x32xf32>
    %85 = vector.shape_cast %84 : vector<1x48x32xf32> to vector<48x32xf32>
    %cst_69 = arith.constant 5.000000e-01 : f32
    %86 = vector.broadcast %cst_69 : f32 to vector<48x32xf32>
    %87 = arith.mulf %86, %83 : vector<48x32xf32>
    %88 = math.exp %87 : vector<48x32xf32>
    %89 = arith.mulf %85, %88 : vector<48x32xf32>
    %90 = arith.addf %74, %89 : vector<48x32xf32>
    %c0_70 = arith.constant 0 : index
    %c0_71 = arith.constant 0 : index
    %c0_72 = arith.constant 0 : index
    %91 = vector.load %arg27[%c0_70, %c0_71, %c0_72] : memref<1x48x32xf32, #tpu.memory_space<vmem>>, vector<1x48x32xf32>
    %92 = vector.shape_cast %91 : vector<1x48x32xf32> to vector<48x32xf32>
    %93 = vector.shape_cast %90 : vector<48x32xf32> to vector<1x48x32xf32>
    tpu.vector_store %arg27[%c0_70, %c0_71, %c0_72], %93 {strides = array<i32>} : memref<1x48x32xf32, #tpu.memory_space<vmem>>, vector<1x48x32xf32>,
    %cst_73 = arith.constant 1.000000e+00 : f32
    %94 = vector.broadcast %cst_73 : f32 to vector<48x32xf32>
    %95 = arith.addf %94, %83 : vector<48x32xf32>
    %96 = arith.mulf %74, %74 : vector<48x32xf32>
    %97 = arith.subf %95, %96 : vector<48x32xf32>
    %98 = math.exp %83 : vector<48x32xf32>
    %99 = arith.subf %97, %98 : vector<48x32xf32>
    %100 = vector.shape_cast %99 : vector<48x32xf32> to vector<1x48x32xf32>
    %cst_74 = arith.constant dense<0.000000e+00> : vector<1xf32>
    %101 = vector.multi_reduction <add>, %100, %cst_74 [1, 2] : vector<1x48x32xf32> to vector<1xf32>
    %102 = vector.shape_cast %101 : vector<1xf32> to vector<1x1x1xf32>
    %103 = vector.extract %102[0, 0, 0] : f32 from vector<1x1x1xf32>
    %cst_75 = arith.constant -5.000000e-01 : f32
    %104 = arith.mulf %cst_75, %103 : f32
    %105 = vector.broadcast %104 : f32 to vector<1x1xf32>
    %c0_76 = arith.constant 0 : index
    %c0_77 = arith.constant 0 : index
    %c0_78 = arith.constant 0 : index
    %106 = vector.load %arg30[%c0_76, %c0_77, %c0_78] : memref<1x1x1xf32, #tpu.memory_space<vmem>>, vector<1x1x1xf32>
    %107 = vector.shape_cast %106 : vector<1x1x1xf32> to vector<1x1xf32>
    %108 = vector.shape_cast %105 : vector<1x1xf32> to vector<1x1x1xf32>
    tpu.vector_store %arg30[%c0_76, %c0_77, %c0_78], %108 {strides = array<i32>} : memref<1x1x1xf32, #tpu.memory_space<vmem>>, vector<1x1x1xf32>,
    %c0_79 = arith.constant 0 : index
    %c0_80 = arith.constant 0 : index
    %109 = vector.load %arg15[%c0_79, %c0_80] : memref<32x64xbf16, #tpu.memory_space<vmem>>, vector<32x64xbf16>
    %c0_81 = arith.constant 0 : index
    %c0_82 = arith.constant 0 : index
    %110 = vector.load %arg16[%c0_81, %c0_82] : memref<48x48xbf16, #tpu.memory_space<vmem>>, vector<48x48xbf16>
    %c0_83 = arith.constant 0 : index
    %c0_84 = arith.constant 0 : index
    %111 = vector.load %arg17[%c0_83, %c0_84] : memref<1x64xf32, #tpu.memory_space<vmem>>, vector<1x64xf32>
    %112 = arith.truncf %90 : vector<48x32xf32> to vector<48x32xbf16>
    %cst_85 = arith.constant dense<0.000000e+00> : vector<48x64xf32>
    %113 = tpu.matmul %112, %109, %cst_85 {dimension_numbers = #tpu.dot_dimension_numbers<[1], [0], [0], [1], [0, 0, 1, 1], [], []>} : vector<48x32xbf16>, vector<32x64xbf16>, vector<48x64xf32> -> vector<48x64xf32>
    %114 = arith.truncf %113 : vector<48x64xf32> to vector<48x64xbf16>
    %cst_86 = arith.constant dense<0.000000e+00> : vector<48x64xf32>
    %115 = tpu.matmul %110, %114, %cst_86 {dimension_numbers = #tpu.dot_dimension_numbers<[1], [0], [0], [1], [0, 0, 1, 1], [], []>} : vector<48x48xbf16>, vector<48x64xbf16>, vector<48x64xf32> -> vector<48x64xf32>
    %116 = vector.broadcast %111 : vector<1x64xf32> to vector<48x64xf32>
    %117 = arith.addf %115, %116 : vector<48x64xf32>
    %118 = math.tanh %117 : vector<48x64xf32>
    %c0_87 = arith.constant 0 : index
    %c0_88 = arith.constant 0 : index
    %c0_89 = arith.constant 0 : index
    %119 = vector.load %arg18[%c0_87, %c0_88, %c0_89] : memref<4x64x64xbf16, #tpu.memory_space<vmem>>, vector<1x64x64xbf16>
    %120 = vector.shape_cast %119 : vector<1x64x64xbf16> to vector<64x64xbf16>
    %c0_90 = arith.constant 0 : index
    %c0_91 = arith.constant 0 : index
    %c0_92 = arith.constant 0 : index
    %121 = vector.load %arg19[%c0_90, %c0_91, %c0_92] : memref<4x48x48xbf16, #tpu.memory_space<vmem>>, vector<1x48x48xbf16>
    %122 = vector.shape_cast %121 : vector<1x48x48xbf16> to vector<48x48xbf16>
    %c0_93 = arith.constant 0 : index
    %c0_94 = arith.constant 0 : index
    %c0_95 = arith.constant 0 : index
    %123 = vector.load %arg20[%c0_93, %c0_94, %c0_95] : memref<4x1x64xf32, #tpu.memory_space<vmem>>, vector<1x1x64xf32>
    %124 = vector.shape_cast %123 : vector<1x1x64xf32> to vector<1x64xf32>
    %125 = arith.truncf %118 : vector<48x64xf32> to vector<48x64xbf16>
    %cst_96 = arith.constant dense<0.000000e+00> : vector<48x64xf32>
    %126 = tpu.matmul %125, %120, %cst_96 {dimension_numbers = #tpu.dot_dimension_numbers<[1], [0], [0], [1], [0, 0, 1, 1], [], []>} : vector<48x64xbf16>, vector<64x64xbf16>, vector<48x64xf32> -> vector<48x64xf32>
    %127 = arith.truncf %126 : vector<48x64xf32> to vector<48x64xbf16>
    %cst_97 = arith.constant dense<0.000000e+00> : vector<48x64xf32>
    %128 = tpu.matmul %122, %127, %cst_97 {dimension_numbers = #tpu.dot_dimension_numbers<[1], [0], [0], [1], [0, 0, 1, 1], [], []>} : vector<48x48xbf16>, vector<48x64xbf16>, vector<48x64xf32> -> vector<48x64xf32>
    %129 = vector.broadcast %124 : vector<1x64xf32> to vector<48x64xf32>
    %130 = arith.addf %128, %129 : vector<48x64xf32>
    %131 = math.tanh %130 : vector<48x64xf32>
    %c1_98 = arith.constant 1 : index
    %c0_99 = arith.constant 0 : index
    %c0_100 = arith.constant 0 : index
    %132 = vector.load %arg18[%c1_98, %c0_99, %c0_100] : memref<4x64x64xbf16, #tpu.memory_space<vmem>>, vector<1x64x64xbf16>
    %133 = vector.shape_cast %132 : vector<1x64x64xbf16> to vector<64x64xbf16>
    %c1_101 = arith.constant 1 : index
    %c0_102 = arith.constant 0 : index
    %c0_103 = arith.constant 0 : index
    %134 = vector.load %arg19[%c1_101, %c0_102, %c0_103] : memref<4x48x48xbf16, #tpu.memory_space<vmem>>, vector<1x48x48xbf16>
    %135 = vector.shape_cast %134 : vector<1x48x48xbf16> to vector<48x48xbf16>
    %c1_104 = arith.constant 1 : index
    %c0_105 = arith.constant 0 : index
    %c0_106 = arith.constant 0 : index
    %136 = vector.load %arg20[%c1_104, %c0_105, %c0_106] : memref<4x1x64xf32, #tpu.memory_space<vmem>>, vector<1x1x64xf32>
    %137 = vector.shape_cast %136 : vector<1x1x64xf32> to vector<1x64xf32>
    %138 = arith.truncf %131 : vector<48x64xf32> to vector<48x64xbf16>
    %cst_107 = arith.constant dense<0.000000e+00> : vector<48x64xf32>
    %139 = tpu.matmul %138, %133, %cst_107 {dimension_numbers = #tpu.dot_dimension_numbers<[1], [0], [0], [1], [0, 0, 1, 1], [], []>} : vector<48x64xbf16>, vector<64x64xbf16>, vector<48x64xf32> -> vector<48x64xf32>
    %140 = arith.truncf %139 : vector<48x64xf32> to vector<48x64xbf16>
    %cst_108 = arith.constant dense<0.000000e+00> : vector<48x64xf32>
    %141 = tpu.matmul %135, %140, %cst_108 {dimension_numbers = #tpu.dot_dimension_numbers<[1], [0], [0], [1], [0, 0, 1, 1], [], []>} : vector<48x48xbf16>, vector<48x64xbf16>, vector<48x64xf32> -> vector<48x64xf32>
    %142 = vector.broadcast %137 : vector<1x64xf32> to vector<48x64xf32>
    %143 = arith.addf %141, %142 : vector<48x64xf32>
    %144 = math.tanh %143 : vector<48x64xf32>
    %145 = arith.addf %144, %118 : vector<48x64xf32>
    %c2_109 = arith.constant 2 : index
    %c0_110 = arith.constant 0 : index
    %c0_111 = arith.constant 0 : index
    %146 = vector.load %arg18[%c2_109, %c0_110, %c0_111] : memref<4x64x64xbf16, #tpu.memory_space<vmem>>, vector<1x64x64xbf16>
    %147 = vector.shape_cast %146 : vector<1x64x64xbf16> to vector<64x64xbf16>
    %c2_112 = arith.constant 2 : index
    %c0_113 = arith.constant 0 : index
    %c0_114 = arith.constant 0 : index
    %148 = vector.load %arg19[%c2_112, %c0_113, %c0_114] : memref<4x48x48xbf16, #tpu.memory_space<vmem>>, vector<1x48x48xbf16>
    %149 = vector.shape_cast %148 : vector<1x48x48xbf16> to vector<48x48xbf16>
    %c2_115 = arith.constant 2 : index
    %c0_116 = arith.constant 0 : index
    %c0_117 = arith.constant 0 : index
    %150 = vector.load %arg20[%c2_115, %c0_116, %c0_117] : memref<4x1x64xf32, #tpu.memory_space<vmem>>, vector<1x1x64xf32>
    %151 = vector.shape_cast %150 : vector<1x1x64xf32> to vector<1x64xf32>
    %152 = arith.truncf %145 : vector<48x64xf32> to vector<48x64xbf16>
    %cst_118 = arith.constant dense<0.000000e+00> : vector<48x64xf32>
    %153 = tpu.matmul %152, %147, %cst_118 {dimension_numbers = #tpu.dot_dimension_numbers<[1], [0], [0], [1], [0, 0, 1, 1], [], []>} : vector<48x64xbf16>, vector<64x64xbf16>, vector<48x64xf32> -> vector<48x64xf32>
    %154 = arith.truncf %153 : vector<48x64xf32> to vector<48x64xbf16>
    %cst_119 = arith.constant dense<0.000000e+00> : vector<48x64xf32>
    %155 = tpu.matmul %149, %154, %cst_119 {dimension_numbers = #tpu.dot_dimension_numbers<[1], [0], [0], [1], [0, 0, 1, 1], [], []>} : vector<48x48xbf16>, vector<48x64xbf16>, vector<48x64xf32> -> vector<48x64xf32>
    %156 = vector.broadcast %151 : vector<1x64xf32> to vector<48x64xf32>
    %157 = arith.addf %155, %156 : vector<48x64xf32>
    %158 = math.tanh %157 : vector<48x64xf32>
    %c3_120 = arith.constant 3 : index
    %c0_121 = arith.constant 0 : index
    %c0_122 = arith.constant 0 : index
    %159 = vector.load %arg18[%c3_120, %c0_121, %c0_122] : memref<4x64x64xbf16, #tpu.memory_space<vmem>>, vector<1x64x64xbf16>
    %160 = vector.shape_cast %159 : vector<1x64x64xbf16> to vector<64x64xbf16>
    %c3_123 = arith.constant 3 : index
    %c0_124 = arith.constant 0 : index
    %c0_125 = arith.constant 0 : index
    %161 = vector.load %arg19[%c3_123, %c0_124, %c0_125] : memref<4x48x48xbf16, #tpu.memory_space<vmem>>, vector<1x48x48xbf16>
    %162 = vector.shape_cast %161 : vector<1x48x48xbf16> to vector<48x48xbf16>
    %c3_126 = arith.constant 3 : index
    %c0_127 = arith.constant 0 : index
    %c0_128 = arith.constant 0 : index
    %163 = vector.load %arg20[%c3_126, %c0_127, %c0_128] : memref<4x1x64xf32, #tpu.memory_space<vmem>>, vector<1x1x64xf32>
    %164 = vector.shape_cast %163 : vector<1x1x64xf32> to vector<1x64xf32>
    %165 = arith.truncf %158 : vector<48x64xf32> to vector<48x64xbf16>
    %cst_129 = arith.constant dense<0.000000e+00> : vector<48x64xf32>
    %166 = tpu.matmul %165, %160, %cst_129 {dimension_numbers = #tpu.dot_dimension_numbers<[1], [0], [0], [1], [0, 0, 1, 1], [], []>} : vector<48x64xbf16>, vector<64x64xbf16>, vector<48x64xf32> -> vector<48x64xf32>
    %167 = arith.truncf %166 : vector<48x64xf32> to vector<48x64xbf16>
    %cst_130 = arith.constant dense<0.000000e+00> : vector<48x64xf32>
    %168 = tpu.matmul %162, %167, %cst_130 {dimension_numbers = #tpu.dot_dimension_numbers<[1], [0], [0], [1], [0, 0, 1, 1], [], []>} : vector<48x48xbf16>, vector<48x64xbf16>, vector<48x64xf32> -> vector<48x64xf32>
    %169 = vector.broadcast %164 : vector<1x64xf32> to vector<48x64xf32>
    %170 = arith.addf %168, %169 : vector<48x64xf32>
    %171 = math.tanh %170 : vector<48x64xf32>
    %172 = arith.addf %171, %145 : vector<48x64xf32>
    %c0_131 = arith.constant 0 : index
    %c0_132 = arith.constant 0 : index
    %173 = vector.load %arg21[%c0_131, %c0_132] : memref<64x32xbf16, #tpu.memory_space<vmem>>, vector<64x32xbf16>
    %c0_133 = arith.constant 0 : index
    %c0_134 = arith.constant 0 : index
    %174 = vector.load %arg22[%c0_133, %c0_134] : memref<48x48xbf16, #tpu.memory_space<vmem>>, vector<48x48xbf16>
    %c0_135 = arith.constant 0 : index
    %c0_136 = arith.constant 0 : index
    %175 = vector.load %arg23[%c0_135, %c0_136] : memref<1x32xf32, #tpu.memory_space<vmem>>, vector<1x32xf32>
    %176 = arith.truncf %172 : vector<48x64xf32> to vector<48x64xbf16>
    %cst_137 = arith.constant dense<0.000000e+00> : vector<48x32xf32>
    %177 = tpu.matmul %176, %173, %cst_137 {dimension_numbers = #tpu.dot_dimension_numbers<[1], [0], [0], [1], [0, 0, 1, 1], [], []>} : vector<48x64xbf16>, vector<64x32xbf16>, vector<48x32xf32> -> vector<48x32xf32>
    %178 = arith.truncf %177 : vector<48x32xf32> to vector<48x32xbf16>
    %cst_138 = arith.constant dense<0.000000e+00> : vector<48x32xf32>
    %179 = tpu.matmul %174, %178, %cst_138 {dimension_numbers = #tpu.dot_dimension_numbers<[1], [0], [0], [1], [0, 0, 1, 1], [], []>} : vector<48x48xbf16>, vector<48x32xbf16>, vector<48x32xf32> -> vector<48x32xf32>
    %180 = vector.broadcast %175 : vector<1x32xf32> to vector<48x32xf32>
    %181 = arith.addf %179, %180 : vector<48x32xf32>
    %c0_139 = arith.constant 0 : index
    %c0_140 = arith.constant 0 : index
    %182 = vector.load %arg24[%c0_139, %c0_140] : memref<64x32xbf16, #tpu.memory_space<vmem>>, vector<64x32xbf16>
    %c0_141 = arith.constant 0 : index
    %c0_142 = arith.constant 0 : index
    %183 = vector.load %arg25[%c0_141, %c0_142] : memref<48x48xbf16, #tpu.memory_space<vmem>>, vector<48x48xbf16>
    %c0_143 = arith.constant 0 : index
    %c0_144 = arith.constant 0 : index
    %184 = vector.load %arg26[%c0_143, %c0_144] : memref<1x32xf32, #tpu.memory_space<vmem>>, vector<1x32xf32>
    %185 = arith.truncf %172 : vector<48x64xf32> to vector<48x64xbf16>
    %cst_145 = arith.constant dense<0.000000e+00> : vector<48x32xf32>
    %186 = tpu.matmul %185, %182, %cst_145 {dimension_numbers = #tpu.dot_dimension_numbers<[1], [0], [0], [1], [0, 0, 1, 1], [], []>} : vector<48x64xbf16>, vector<64x32xbf16>, vector<48x32xf32> -> vector<48x32xf32>
    %187 = arith.truncf %186 : vector<48x32xf32> to vector<48x32xbf16>
    %cst_146 = arith.constant dense<0.000000e+00> : vector<48x32xf32>
    %188 = tpu.matmul %183, %187, %cst_146 {dimension_numbers = #tpu.dot_dimension_numbers<[1], [0], [0], [1], [0, 0, 1, 1], [], []>} : vector<48x48xbf16>, vector<48x32xbf16>, vector<48x32xf32> -> vector<48x32xf32>
    %189 = vector.broadcast %184 : vector<1x32xf32> to vector<48x32xf32>
    %190 = arith.addf %188, %189 : vector<48x32xf32>
    %c0_147 = arith.constant 0 : index
    %c0_148 = arith.constant 0 : index
    %c0_149 = arith.constant 0 : index
    %191 = vector.load %arg28[%c0_147, %c0_148, %c0_149] : memref<1x48x32xf32, #tpu.memory_space<vmem>>, vector<1x48x32xf32>
    %192 = vector.shape_cast %191 : vector<1x48x32xf32> to vector<48x32xf32>
    %193 = vector.shape_cast %181 : vector<48x32xf32> to vector<1x48x32xf32>
    tpu.vector_store %arg28[%c0_147, %c0_148, %c0_149], %193 {strides = array<i32>} : memref<1x48x32xf32, #tpu.memory_space<vmem>>, vector<1x48x32xf32>,
    %c0_150 = arith.constant 0 : index
    %c0_151 = arith.constant 0 : index
    %c0_152 = arith.constant 0 : index
    %194 = vector.load %arg29[%c0_150, %c0_151, %c0_152] : memref<1x48x32xf32, #tpu.memory_space<vmem>>, vector<1x48x32xf32>
    %195 = vector.shape_cast %194 : vector<1x48x32xf32> to vector<48x32xf32>
    %196 = vector.shape_cast %190 : vector<48x32xf32> to vector<1x48x32xf32>
    tpu.vector_store %arg29[%c0_150, %c0_151, %c0_152], %196 {strides = array<i32>} : memref<1x48x32xf32, #tpu.memory_space<vmem>>, vector<1x48x32xf32>,
    return
  }
  func.func @transform_0(%arg0: i32) -> (i32, i32, i32) {
    %c0_i32 = arith.constant 0 : i32
    %c0_i32_0 = arith.constant 0 : i32
    %c0_i32_1 = arith.constant 0 : i32
    return %arg0, %c0_i32, %c0_i32_0 : i32, i32, i32
  }
  func.func @transform_1(%arg0: i32) -> (i32, i32, i32) {
    %c0_i32 = arith.constant 0 : i32
    %c0_i32_0 = arith.constant 0 : i32
    %c0_i32_1 = arith.constant 0 : i32
    return %arg0, %c0_i32, %c0_i32_0 : i32, i32, i32
  }
  func.func @transform_2(%arg0: i32) -> (i32, i32) {
    %c0_i32 = arith.constant 0 : i32
    %c0_i32_0 = arith.constant 0 : i32
    %c0_i32_1 = arith.constant 0 : i32
    return %c0_i32, %c0_i32_0 : i32, i32
  }
  func.func @transform_3(%arg0: i32) -> (i32, i32) {
    %c0_i32 = arith.constant 0 : i32
    %c0_i32_0 = arith.constant 0 : i32
    %c0_i32_1 = arith.constant 0 : i32
    return %c0_i32, %c0_i32_0 : i32, i32
  }
  func.func @transform_4(%arg0: i32) -> (i32, i32) {
    %c0_i32 = arith.constant 0 : i32
    %c0_i32_0 = arith.constant 0 : i32
    %c0_i32_1 = arith.constant 0 : i32
    return %c0_i32, %c0_i32_0 : i32, i32
  }
  func.func @transform_5(%arg0: i32) -> (i32, i32, i32) {
    %c0_i32 = arith.constant 0 : i32
    %c0_i32_0 = arith.constant 0 : i32
    %c0_i32_1 = arith.constant 0 : i32
    %c0_i32_2 = arith.constant 0 : i32
    return %c0_i32, %c0_i32_0, %c0_i32_1 : i32, i32, i32
  }
  func.func @transform_6(%arg0: i32) -> (i32, i32, i32) {
    %c0_i32 = arith.constant 0 : i32
    %c0_i32_0 = arith.constant 0 : i32
    %c0_i32_1 = arith.constant 0 : i32
    %c0_i32_2 = arith.constant 0 : i32
    return %c0_i32, %c0_i32_0, %c0_i32_1 : i32, i32, i32
  }
  func.func @transform_7(%arg0: i32) -> (i32, i32, i32) {
    %c0_i32 = arith.constant 0 : i32
    %c0_i32_0 = arith.constant 0 : i32
    %c0_i32_1 = arith.constant 0 : i32
    %c0_i32_2 = arith.constant 0 : i32
    return %c0_i32, %c0_i32_0, %c0_i32_1 : i32, i32, i32
  }
  func.func @transform_8(%arg0: i32) -> (i32, i32) {
    %c0_i32 = arith.constant 0 : i32
    %c0_i32_0 = arith.constant 0 : i32
    %c0_i32_1 = arith.constant 0 : i32
    return %c0_i32, %c0_i32_0 : i32, i32
  }
  func.func @transform_9(%arg0: i32) -> (i32, i32) {
    %c0_i32 = arith.constant 0 : i32
    %c0_i32_0 = arith.constant 0 : i32
    %c0_i32_1 = arith.constant 0 : i32
    return %c0_i32, %c0_i32_0 : i32, i32
  }
  func.func @transform_10(%arg0: i32) -> (i32, i32) {
    %c0_i32 = arith.constant 0 : i32
    %c0_i32_0 = arith.constant 0 : i32
    %c0_i32_1 = arith.constant 0 : i32
    return %c0_i32, %c0_i32_0 : i32, i32
  }
  func.func @transform_11(%arg0: i32) -> (i32, i32) {
    %c0_i32 = arith.constant 0 : i32
    %c0_i32_0 = arith.constant 0 : i32
    %c0_i32_1 = arith.constant 0 : i32
    return %c0_i32, %c0_i32_0 : i32, i32
  }
  func.func @transform_12(%arg0: i32) -> (i32, i32) {
    %c0_i32 = arith.constant 0 : i32
    %c0_i32_0 = arith.constant 0 : i32
    %c0_i32_1 = arith.constant 0 : i32
    return %c0_i32, %c0_i32_0 : i32, i32
  }
  func.func @transform_13(%arg0: i32) -> (i32, i32) {
    %c0_i32 = arith.constant 0 : i32
    %c0_i32_0 = arith.constant 0 : i32
    %c0_i32_1 = arith.constant 0 : i32
    return %c0_i32, %c0_i32_0 : i32, i32
  }
  func.func @transform_14(%arg0: i32) -> (i32, i32) {
    %c0_i32 = arith.constant 0 : i32
    %c0_i32_0 = arith.constant 0 : i32
    %c0_i32_1 = arith.constant 0 : i32
    return %c0_i32, %c0_i32_0 : i32, i32
  }
  func.func @transform_15(%arg0: i32) -> (i32, i32) {
    %c0_i32 = arith.constant 0 : i32
    %c0_i32_0 = arith.constant 0 : i32
    %c0_i32_1 = arith.constant 0 : i32
    return %c0_i32, %c0_i32_0 : i32, i32
  }
  func.func @transform_16(%arg0: i32) -> (i32, i32) {
    %c0_i32 = arith.constant 0 : i32
    %c0_i32_0 = arith.constant 0 : i32
    %c0_i32_1 = arith.constant 0 : i32
    return %c0_i32, %c0_i32_0 : i32, i32
  }
  func.func @transform_17(%arg0: i32) -> (i32, i32, i32) {
    %c0_i32 = arith.constant 0 : i32
    %c0_i32_0 = arith.constant 0 : i32
    %c0_i32_1 = arith.constant 0 : i32
    %c0_i32_2 = arith.constant 0 : i32
    return %c0_i32, %c0_i32_0, %c0_i32_1 : i32, i32, i32
  }
  func.func @transform_18(%arg0: i32) -> (i32, i32, i32) {
    %c0_i32 = arith.constant 0 : i32
    %c0_i32_0 = arith.constant 0 : i32
    %c0_i32_1 = arith.constant 0 : i32
    %c0_i32_2 = arith.constant 0 : i32
    return %c0_i32, %c0_i32_0, %c0_i32_1 : i32, i32, i32
  }
  func.func @transform_19(%arg0: i32) -> (i32, i32, i32) {
    %c0_i32 = arith.constant 0 : i32
    %c0_i32_0 = arith.constant 0 : i32
    %c0_i32_1 = arith.constant 0 : i32
    %c0_i32_2 = arith.constant 0 : i32
    return %c0_i32, %c0_i32_0, %c0_i32_1 : i32, i32, i32
  }
  func.func @transform_20(%arg0: i32) -> (i32, i32) {
    %c0_i32 = arith.constant 0 : i32
    %c0_i32_0 = arith.constant 0 : i32
    %c0_i32_1 = arith.constant 0 : i32
    return %c0_i32, %c0_i32_0 : i32, i32
  }
  func.func @transform_21(%arg0: i32) -> (i32, i32) {
    %c0_i32 = arith.constant 0 : i32
    %c0_i32_0 = arith.constant 0 : i32
    %c0_i32_1 = arith.constant 0 : i32
    return %c0_i32, %c0_i32_0 : i32, i32
  }
  func.func @transform_22(%arg0: i32) -> (i32, i32) {
    %c0_i32 = arith.constant 0 : i32
    %c0_i32_0 = arith.constant 0 : i32
    %c0_i32_1 = arith.constant 0 : i32
    return %c0_i32, %c0_i32_0 : i32, i32
  }
  func.func @transform_23(%arg0: i32) -> (i32, i32) {
    %c0_i32 = arith.constant 0 : i32
    %c0_i32_0 = arith.constant 0 : i32
    %c0_i32_1 = arith.constant 0 : i32
    return %c0_i32, %c0_i32_0 : i32, i32
  }
  func.func @transform_24(%arg0: i32) -> (i32, i32) {
    %c0_i32 = arith.constant 0 : i32
    %c0_i32_0 = arith.constant 0 : i32
    %c0_i32_1 = arith.constant 0 : i32
    return %c0_i32, %c0_i32_0 : i32, i32
  }
  func.func @transform_25(%arg0: i32) -> (i32, i32) {
    %c0_i32 = arith.constant 0 : i32
    %c0_i32_0 = arith.constant 0 : i32
    %c0_i32_1 = arith.constant 0 : i32
    return %c0_i32, %c0_i32_0 : i32, i32
  }
  func.func @transform_26(%arg0: i32) -> (i32, i32, i32) {
    %c0_i32 = arith.constant 0 : i32
    %c0_i32_0 = arith.constant 0 : i32
    %c0_i32_1 = arith.constant 0 : i32
    return %arg0, %c0_i32, %c0_i32_0 : i32, i32, i32
  }
  func.func @transform_27(%arg0: i32) -> (i32, i32, i32) {
    %c0_i32 = arith.constant 0 : i32
    %c0_i32_0 = arith.constant 0 : i32
    %c0_i32_1 = arith.constant 0 : i32
    return %arg0, %c0_i32, %c0_i32_0 : i32, i32, i32
  }
  func.func @transform_28(%arg0: i32) -> (i32, i32, i32) {
    %c0_i32 = arith.constant 0 : i32
    %c0_i32_0 = arith.constant 0 : i32
    %c0_i32_1 = arith.constant 0 : i32
    return %arg0, %c0_i32, %c0_i32_0 : i32, i32, i32
  }
  func.func @transform_29(%arg0: i32) -> (i32, i32, i32) {
    %c0_i32 = arith.constant 0 : i32
    %c0_i32_0 = arith.constant 0 : i32
    %c0_i32_1 = arith.constant 0 : i32
    return %arg0, %c0_i32, %c0_i32_0 : i32, i32, i32
  }
}

</mosaic_0001>

<bundles_post_ra>
// kernel: tile.53
= control target key start
LH: loop header
LB: loop body
LE: loop exit
PB: predicated region body
PF: predicated region fallthrough
CT: control target
= control target key end

     0   :  { %s22_s0 = inlined_call_operand.vmem [shape: f32[16], index: 0, kind: input, shape index: {}]   ;;  %s23_s1 = inlined_call_operand.vmem [shape: f32[2,16], index: 1, kind: output, shape index: {}]  }
   0x1   :  { %v4_v0 = vld [vmem:[%s22_s0] ss:$0 sm:$0xff] }
   0x2   :  { %5 = vst [vmem:[%s23_s1] sm:$0x3] %v4_v0 }

// kernel: tile.54
= control target key start
LH: loop header
LB: loop body
LE: loop exit
PB: predicated region body
PF: predicated region fallthrough
CT: control target
= control target key end

     0   :  { %vm7_vm0 = vcmask 130048   ;;  %vm13_vm1 = vcmask 261248   ;;  %s39_s0 = inlined_call_operand.vmem [shape: f32[2,16], index: 0, kind: input, shape index: {}]   ;;  %s40_s1 = inlined_call_operand.vmem [shape: f32[1,32], index: 1, kind: output, shape index: {}]  }
   0x1   :  { %v4_v0 = vld [vmem:[%s39_s0] sm:$0x3]  ;;  %s22_s0 = smov 16  }
   0x2   :  { %5 = vst [vmem:[#allocation1] sm:$0x3] %v4_v0 }
   0x9   :  { %v10_v1 = vld [vmem:[#allocation1 + $0x1] sm:$0x1]   ;;  %v6_v2 = vld [vmem:[#allocation1] sm:$0x1]  }
   0xa   :  { %11 = vrot.lane.b32.xlu0 %v10_v1, %s22_s0  ;;  %8 = vst.msk [vmem:[#allocation0] sm:$0x1] %vm7_vm0, %v6_v2  }
  0x7c   :  { %v12_v3 = vpop.permute.xlu0 %11  }
  0x7d   :  { %14 = vst.msk [vmem:[#allocation0] sm:$0x1] %vm13_vm1, %v12_v3  }
  0x84   :  { %v18_v4 = vld [vmem:[#allocation0] sm:$0x1] }
  0x85   :  { %20 = vst [vmem:[%s40_s1] sm:$0x1] %v18_v4 }

// kernel: vgae_forward.1
= control target key start
LH: loop header
LB: loop body
LE: loop exit
PB: predicated region body
PF: predicated region fallthrough
CT: control target
= control target key end

     0   :  { %s4395_s6 = smov 1   ;;  %s4396_s10 = smov 2   ;;  %s5234_s0 = inlined_call_operand.smem [shape: u32[30], index: -1, kind: input, shape index: {}] }
   0x1   :  { %s4435_s5 = sld [smem:[%s5234_s0]]   ;;  %s4397_s14 = smov 3  }
   0x2   :  { %s4440_s9 = sld [smem:[%s5234_s0 + %s4395_s6]]   ;;  %s4398_s18 = smov 4  }
   0x3   :  { %s4445_s13 = sld [smem:[%s5234_s0 + %s4396_s10]]   ;;  %s4399_s22 = smov 5  }
   0x4   :  { %s4450_s17 = sld [smem:[%s5234_s0 + %s4397_s14]]   ;;  %s4400_s26 = smov 6  }
   0x5   :  { %s4455_s21 = sld [smem:[%s5234_s0 + %s4398_s18]]   ;;  %s4401_s30 = smov 7  }
   0x6   :  { %s4460_s25 = sld [smem:[%s5234_s0 + %s4399_s22]]   ;;  %s4402_s4 = smov 8  }
   0x7   :  { %s4465_s29 = sld [smem:[%s5234_s0 + %s4400_s26]]   ;;  %s4403_s10 = smov 9  }
   0x8   :  { %5244 = sst [smem:[#allocation5_spill]] %s4440_s9  ;;  %s4404_s15 = smov 10  }
   0x9   :  { %s4470_s3 = sld [smem:[%s5234_s0 + %s4401_s30]]   ;;  %s4405_s20 = smov 11  }
   0xa   :  { %s4475_s8 = sld [smem:[%s5234_s0 + %s4402_s4]]   ;;  %s4406_s26 = smov 12  }
   0xb   :  { %s4480_s14 = sld [smem:[%s5234_s0 + %s4403_s10]]   ;;  %s4407_s1 = smov 13  }
   0xc   :  { %s4485_s19 = sld [smem:[%s5234_s0 + %s4404_s15]]   ;;  %s4408_s7 = smov 14  }
   0xd   :  { %s4490_s24 = sld [smem:[%s5234_s0 + %s4405_s20]]   ;;  %s4409_s15 = smov 15  }
   0xe   :  { %s4495_s30 = sld [smem:[%s5234_s0 + %s4406_s26]]   ;;  %s4410_s22 = smov 16  }
   0xf   :  { %s4500_s6 = sld [smem:[%s5234_s0 + %s4407_s1]]   ;;  %s4411_s28 = smov 17  }
  0x10   :  { %s4505_s12 = sld [smem:[%s5234_s0 + %s4408_s7]]   ;;  %s4412_s7 = smov 18  }
  0x11   :  { %s4510_s20 = sld [smem:[%s5234_s0 + %s4409_s15]]   ;;  %s4413_s15 = smov 19  }
  0x12   :  { %s4515_s27 = sld [smem:[%s5234_s0 + %s4410_s22]]   ;;  %s4414_s22 = smov 20  }
  0x13   :  { %s4520_s4 = sld [smem:[%s5234_s0 + %s4411_s28]]   ;;  %s4415_s28 = smov 21  }
  0x14   :  { %s4525_s9 = sld [smem:[%s5234_s0 + %s4412_s7]]   ;;  %s4416_s7 = smov 22  }
  0x17   :  { %5245 = sst [smem:[#allocation6_spill]] %s4510_s20 }
  0x18   :  { %5246 = sst [smem:[#allocation7_spill]] %s4515_s27 }
  0x19   :  { %5247 = sst [smem:[#allocation8_spill]] %s4520_s4 }
  0x1a   :  { %5248 = sst [smem:[#allocation9_spill]] %s4525_s9 }
  0x1b   :  { %s4530_s20 = sld [smem:[%s5234_s0 + %s4413_s15]]   ;;  %s4417_s15 = smov 23  }
  0x1c   :  { %s4535_s27 = sld [smem:[%s5234_s0 + %s4414_s22]]   ;;  %s4418_s22 = smov 24  }
  0x1d   :  { %s4540_s4 = sld [smem:[%s5234_s0 + %s4415_s28]]   ;;  %s4419_s28 = smov 25  }
  0x1e   :  { %s4545_s9 = sld [smem:[%s5234_s0 + %s4416_s7]]   ;;  %s4420_s7 = smov 26  }
  0x21   :  { %5249 = sst [smem:[#allocation10_spill]] %s4530_s20 }
  0x22   :  { %5250 = sst [smem:[#allocation11_spill]] %s4535_s27 }
  0x23   :  { %5251 = sst [smem:[#allocation12_spill]] %s4540_s4 }
  0x24   :  { %5252 = sst [smem:[#allocation13_spill]] %s4545_s9 }
  0x25   :  { %s4550_s20 = sld [smem:[%s5234_s0 + %s4417_s15]]   ;;  %s4421_s15 = smov 27  }
  0x26   :  { %s4555_s27 = sld [smem:[%s5234_s0 + %s4418_s22]]   ;;  %s4422_s22 = smov 28  }
  0x27   :  { %s4560_s4 = sld [smem:[%s5234_s0 + %s4419_s28]]   ;;  %s4423_s28 = smov 29  }
  0x28   :  { %s4565_s9 = sld [smem:[%s5234_s0 + %s4420_s7]]  }
  0x2b   :  { %5253 = sst [smem:[#allocation14_spill]] %s4550_s20 }
  0x2c   :  { %5254 = sst [smem:[#allocation15_spill]] %s4555_s27 }
  0x2d   :  { %5255 = sst [smem:[#allocation16_spill]] %s4560_s4 }
  0x2e   :  { %s4570_s20 = sld [smem:[%s5234_s0 + %s4421_s15]]  }
  0x2f   :  { %s4575_s27 = sld [smem:[%s5234_s0 + %s4422_s22]]  }
  0x30   :  { %s4580_s4 = sld [smem:[%s5234_s0 + %s4423_s28]]  }
  0x31   :  { %v4133_v0 = vld [vmem:[%s4445_s13] sm:$0xff]   ;;  %v4424_v1 = vmov 0.0   ;;  %v4134_v2 = vld [vmem:[%s4445_s13 + $0x8] sm:$0xff]   ;;  %vm4425_vm0 = vmmov 0   ;;  %vm151_vm1 = vcmask 261120   ;;  %v121_v6 = vld [vmem:[%s4435_s5 + $0x10] sm:$0xff] }
  0x32   :  { %3575 = vmatprep.subr.bf16.mxu0 %v4424_v1  ;;  %3591 = vmatprep.subr.bf16.mxu1 %v4424_v1  ;;  %v119_v3 = vld [vmem:[%s4435_s5] sm:$0xff]  ;;  %v120_v4 = vld [vmem:[%s4435_s5 + $0x8] sm:$0xff]  ;;  %v122_v7 = vld [vmem:[%s4435_s5 + $0x18] sm:$0xff] }
  0x33   :  { %3576 = vmatpush3.bf16.msra.mxu0 %v4133_v0  ;;  %3579 = vmatprep.mubr.msk.bf16.mxu0 %vm4425_vm0, %v4424_v1  ;;  %v136_v5 = vpack.c.bf16 %v120_v4, %v119_v3  ;;  %v137_v8 = vpack.c.bf16 %v122_v7, %v121_v6  ;;  %v123_v9 = vld [vmem:[%s4435_s5 + $0x20] sm:$0xff]  ;;  %v124_v10 = vld [vmem:[%s4435_s5 + $0x28] sm:$0xff] }
  0x34   :  { %3577 = vmatprep.subr.bf16.mxu0 %v4424_v1  ;;  %3597 = vmatprep.mubr.msk.bf16.mxu1 %vm4425_vm0, %v4424_v1  ;;  %v138_v11 = vpack.c.bf16 %v124_v10, %v123_v9 }
  0x37   :  { %3578 = vmatpush3.bf16.msra.mxu0 %v4134_v2 }
  0x38   :  { %3609 = vmatprep.subr.bf16.mxu0 %v4424_v1 }
  0x3a   :  { %3580 = vmatmul.mubr.msk.bf16.vlgmr.msra.gmra.mrb[0].mxu0 %vm151_vm1, %v136_v5 }
  0x3b   :  { %3583 = vmatprep.mubr.msk.bf16.mxu0 %vm4425_vm0, %v4424_v1 }
  0x42   :  { %3584 = vmatmul.mubr.msk.bf16.gmra.mrb[4].mxu0 %vm151_vm1, %v137_v8 }
  0x43   :  { %3587 = vmatprep.mubr.msk.bf16.mxu0 %vm4425_vm0, %v4424_v1 }
  0x4a   :  { %3588 = vmatmul.mubr.msk.bf16.gmra.mrb[8].mxu0 %vm151_vm1, %v138_v11 }
  0x4b   :  { %3617 = vmatprep.mubr.msk.bf16.mxu0 %vm4425_vm0, %v4424_v1 }
  0x4c   :  { %65 = vsyncpa [#allocation3], 0  ;;  %v4138_v12 = vld [vmem:[%s4460_s25] sm:$0xff]   ;;  %vm242_vm2 = vcmask 392192   ;;  %v4136_v29 = vld [vmem:[%s4450_s17 + $0x8] sm:$0xff]   ;;  %vm357_vm3 = vcmask 523264  }
  0x4d   :  { %3610 = vmatpush3.bf16.msra.mxu0 %v4138_v12  ;;  %v4135_v28 = vld [vmem:[%s4450_s17] sm:$0xff]   ;;  %v4137_v30 = vld [vmem:[%s4450_s17 + $0x10] sm:$0xff]   ;;  %v4139_v31 = vld [vmem:[%s4460_s25 + $0x8] sm:$0xff]   ;;  %s5256_s0 = sld [smem:[#allocation5_spill]]  ;;  %s5257_s5 = sld [smem:[#allocation8_spill]]  ;;  %vm1637_vm4 = vcmask 0  }
  0x4e   :  { %3611 = vmatprep.subr.bf16.mxu0 %v4424_v1  ;;  %v4140_v32 = vld [vmem:[%s4460_s25 + $0x10] sm:$0xff]   ;;  %v4141_v33 = vld [vmem:[%s4460_s25 + $0x18] sm:$0xff]   ;;  %v3120_v34 = vld [vmem:[%s4455_s21] ss:$0 sm:$0xff]  ;;  %s5258_s17 = sld [smem:[#allocation6_spill]]  ;;  %s5259_s21 = sld [smem:[#allocation7_spill]] }
  0x4f   :  { %v4145_v62 = vld [vmem:[%s4460_s25 + $0x20] sm:$0xff]  }
  0x51   :  { %3612 = vmatpush3.bf16.msra.mxu0 %v4139_v31 }
  0x52   :  { %3613 = vmatprep.subr.bf16.mxu0 %v4424_v1 }
  0x55   :  { %3614 = vmatpush3.bf16.msra.mxu0 %v4140_v32 }
  0x56   :  { %3615 = vmatprep.subr.bf16.mxu0 %v4424_v1 }
  0x59   :  { %3616 = vmatpush3.bf16.msra.mxu0 %v4141_v33 }
  0x5a   :  { %3647 = vmatprep.subr.bf16.mxu0 %v4424_v1 }
 0x10d   :  { %v195_v13 = vpop.f32.mrb[0].mxu0 }
 0x10e   :  { %v3581_v14 = vpop.f32.mrb[1].mxu0 }
 0x10f   :  { %v198_v15 = vpop.f32.mrb[2].mxu0 }
 0x110   :  { %v218_v16 = vpack.c.bf16 %v198_v15, %v195_v13  ;;  %v3582_v17 = vpop.f32.mrb[3].mxu0  ;;  %v4142_v15 = vld [vmem:[%s4465_s29] sm:$0xff]  }
 0x111   :  { %v4144_v17 = vld [vmem:[%s4465_s29 + $0x10] sm:$0xff]  }
 0x112   :  { %3592 = vmatpush3.bf16.msra.mxu1 %v218_v16  ;;  %v4143_v16 = vld [vmem:[%s4465_s29 + $0x8] sm:$0xff]  }
 0x113   :  { %3593 = vmatprep.subr.bf16.mxu1 %v4424_v1 }
 0x115   :  { %v203_v18 = vpop.f32.mrb[4].mxu0 }
 0x116   :  { %v3585_v19 = vpop.f32.mrb[5].mxu0 }
 0x117   :  { %v206_v20 = vpop.f32.mrb[6].mxu0  ;;  %v4147_v19 = vld [vmem:[%s4460_s25 + $0x30] sm:$0xff]  }
 0x118   :  { %v219_v21 = vpack.c.bf16 %v206_v20, %v203_v18  ;;  %v3586_v22 = vpop.f32.mrb[7].mxu0  ;;  %v4146_v18 = vld [vmem:[%s4460_s25 + $0x28] sm:$0xff]   ;;  %v4148_v20 = vld [vmem:[%s4460_s25 + $0x38] sm:$0xff]  }
 0x11a   :  { %3594 = vmatpush3.bf16.msra.mxu1 %v219_v21  ;;  %v3134_v21 = vld [vmem:[%s4470_s3] ss:$0 sm:$0xff] }
 0x11b   :  { %3595 = vmatprep.subr.bf16.mxu1 %v4424_v1 }
 0x11d   :  { %v211_v23 = vpop.f32.mrb[8].mxu0 }
 0x11e   :  { %v3589_v24 = vpop.f32.mrb[9].mxu0 }
 0x11f   :  { %v214_v25 = vpop.f32.mrb[10].mxu0 }
 0x120   :  { %v220_v26 = vpack.c.bf16 %v214_v25, %v211_v23  ;;  %v3590_v27 = vpop.f32.mrb[11].mxu0 }
 0x122   :  { %3596 = vmatpush3.bf16.msra.mxu1 %v220_v26 }
 0x123   :  { %3629 = vmatprep.subr.bf16.mxu1 %v4424_v1 }
 0x125   :  { %3598 = vmatmul.mubr.msk.bf16.vlgmr.msra.gmra.mrb[0].mxu1 %vm242_vm2, %v4135_v28 }
 0x126   :  { %3601 = vmatprep.mubr.msk.bf16.mxu1 %vm4425_vm0, %v4424_v1 }
 0x12d   :  { %3602 = vmatmul.mubr.msk.bf16.gmra.mrb[4].mxu1 %vm242_vm2, %v4136_v29 }
 0x12e   :  { %3605 = vmatprep.mubr.msk.bf16.mxu1 %vm4425_vm0, %v4424_v1 }
 0x135   :  { %3606 = vmatmul.mubr.msk.bf16.gmra.mrb[8].mxu1 %vm242_vm2, %v4137_v30 }
 0x136   :  { %3635 = vmatprep.mubr.msk.bf16.mxu1 %vm4425_vm0, %v4424_v1 }
 0x1f8   :  { %v286_v35 = vpop.f32.mrb[0].mxu1 }
 0x1f9   :  { %v287_v36 = vadd.f32 %v3120_v34, %v286_v35  ;;  %v3599_v37 = vpop.f32.mrb[1].mxu1 }
 0x1fa   :  { %v289_v38 = vpop.f32.mrb[2].mxu1 }
 0x1fb   :  { %v290_v39 = vadd.f32 %v3120_v34, %v289_v38  ;;  %v3600_v40 = vpop.f32.mrb[3].mxu1  ;;  %4227 = vtanh.f32 %v287_v36 }
 0x1fd   :  { %4229 = vtanh.f32 %v290_v39 }
 0x200   :  { %v294_v41 = vpop.f32.mrb[4].mxu1 }
 0x201   :  { %v295_v42 = vadd.f32 %v3120_v34, %v294_v41  ;;  %v3603_v43 = vpop.f32.mrb[5].mxu1 }
 0x202   :  { %v297_v44 = vpop.f32.mrb[6].mxu1 }
 0x203   :  { %v298_v45 = vadd.f32 %v3120_v34, %v297_v44  ;;  %v3604_v46 = vpop.f32.mrb[7].mxu1  ;;  %4231 = vtanh.f32 %v295_v42 }
 0x205   :  { %4233 = vtanh.f32 %v298_v45  ;;  %v4631_v47 = vpop.eup %4227 }
 0x207   :  { %v4633_v48 = vpop.eup %4229 }
 0x208   :  { %v330_v49 = vpack.c.bf16 %v4633_v48, %v4631_v47  ;;  %v302_v50 = vpop.f32.mrb[8].mxu1 }
 0x209   :  { %v303_v51 = vadd.f32 %v3120_v34, %v302_v50  ;;  %v3607_v52 = vpop.f32.mrb[9].mxu1 }
 0x20a   :  { %v305_v53 = vpop.f32.mrb[10].mxu1  ;;  %3618 = vmatmul.mubr.msk.bf16.vlgmr.msra.gmra.mrb[12].mxu0 %vm357_vm3, %v330_v49 }
 0x20b   :  { %v306_v54 = vadd.f32 %v3120_v34, %v305_v53  ;;  %v3608_v55 = vpop.f32.mrb[11].mxu1  ;;  %3621 = vmatprep.mubr.msk.bf16.mxu0 %vm4425_vm0, %v4424_v1  ;;  %4235 = vtanh.f32 %v303_v51  ;;  %3648 = vmatpush3.bf16.msra.mxu0 %v4145_v62 }
 0x20c   :  { %3649 = vmatprep.subr.bf16.mxu0 %v4424_v1 }
 0x20d   :  { %4237 = vtanh.f32 %v306_v54  ;;  %v4640_v56 = vpop.eup %4231 }
 0x20f   :  { %v4642_v57 = vpop.eup %4233  ;;  %3650 = vmatpush3.bf16.msra.mxu0 %v4146_v18 }
 0x210   :  { %v331_v58 = vpack.c.bf16 %v4642_v57, %v4640_v56  ;;  %3651 = vmatprep.subr.bf16.mxu0 %v4424_v1 }
 0x212   :  { %3622 = vmatmul.mubr.msk.bf16.gmra.mrb[16].mxu0 %vm357_vm3, %v331_v58 }
 0x213   :  { %3625 = vmatprep.mubr.msk.bf16.mxu0 %vm4425_vm0, %v4424_v1  ;;  %3652 = vmatpush3.bf16.msra.mxu0 %v4147_v19 }
 0x214   :  { %3653 = vmatprep.subr.bf16.mxu0 %v4424_v1 }
 0x215   :  { %v4649_v59 = vpop.eup %4235 }
 0x217   :  { %v4651_v60 = vpop.eup %4237  ;;  %3654 = vmatpush3.bf16.msra.mxu0 %v4148_v20 }
 0x218   :  { %v332_v61 = vpack.c.bf16 %v4651_v60, %v4649_v59  ;;  %3685 = vmatprep.subr.bf16.mxu0 %v4424_v1 }
 0x21a   :  { %3626 = vmatmul.mubr.msk.bf16.gmra.mrb[20].mxu0 %vm357_vm3, %v332_v61 }
 0x21b   :  { %3655 = vmatprep.mubr.msk.bf16.mxu0 %vm4425_vm0, %v4424_v1 }
 0x2dd   :  { %v401_v63 = vpop.f32.mrb[12].mxu0 }
 0x2de   :  { %v3619_v0 = vpop.f32.mrb[13].mxu0 }
 0x2df   :  { %v404_v2 = vpop.f32.mrb[14].mxu0 }
 0x2e0   :  { %v424_v3 = vpack.c.bf16 %v404_v2, %v401_v63  ;;  %v3620_v4 = vpop.f32.mrb[15].mxu0 }
 0x2e2   :  { %3630 = vmatpush3.bf16.msra.mxu1 %v424_v3 }
 0x2e3   :  { %3631 = vmatprep.subr.bf16.mxu1 %v4424_v1 }
 0x2e5   :  { %v409_v5 = vpop.f32.mrb[16].mxu0 }
 0x2e6   :  { %v3623_v6 = vpop.f32.mrb[17].mxu0 }
 0x2e7   :  { %v412_v7 = vpop.f32.mrb[18].mxu0 }
 0x2e8   :  { %v425_v8 = vpack.c.bf16 %v412_v7, %v409_v5  ;;  %v3624_v9 = vpop.f32.mrb[19].mxu0  ;;  %v4149_v7 = vld [vmem:[%s4465_s29 + $0x18] sm:$0xff]  }
 0x2e9   :  { %v4151_v9 = vld [vmem:[%s4465_s29 + $0x28] sm:$0xff]  }
 0x2ea   :  { %3632 = vmatpush3.bf16.msra.mxu1 %v425_v8  ;;  %v4150_v8 = vld [vmem:[%s4465_s29 + $0x20] sm:$0xff]  }
 0x2eb   :  { %3633 = vmatprep.subr.bf16.mxu1 %v4424_v1 }
 0x2ed   :  { %v417_v10 = vpop.f32.mrb[20].mxu0 }
 0x2ee   :  { %v3627_v11 = vpop.f32.mrb[21].mxu0 }
 0x2ef   :  { %v420_v12 = vpop.f32.mrb[22].mxu0  ;;  %v4153_v11 = vld [vmem:[%s4460_s25 + $0x48] sm:$0xff]  }
 0x2f0   :  { %v426_v13 = vpack.c.bf16 %v420_v12, %v417_v10  ;;  %v3628_v14 = vpop.f32.mrb[23].mxu0  ;;  %v4152_v10 = vld [vmem:[%s4460_s25 + $0x40] sm:$0xff]   ;;  %v4154_v12 = vld [vmem:[%s4460_s25 + $0x50] sm:$0xff]  }
 0x2f1   :  { %v3163_v14 = vld [vmem:[%s4470_s3 + $0x1] ss:$0 sm:$0xff] }
 0x2f2   :  { %3634 = vmatpush3.bf16.msra.mxu1 %v426_v13  ;;  %v4155_v13 = vld [vmem:[%s4460_s25 + $0x58] sm:$0xff]  }
 0x2f3   :  { %3667 = vmatprep.subr.bf16.mxu1 %v4424_v1 }
 0x2f5   :  { %3636 = vmatmul.mubr.msk.bf16.vlgmr.msra.gmra.mrb[12].mxu1 %vm242_vm2, %v4142_v15 }
 0x2f6   :  { %3639 = vmatprep.mubr.msk.bf16.mxu1 %vm4425_vm0, %v4424_v1 }
 0x2fd   :  { %3640 = vmatmul.mubr.msk.bf16.gmra.mrb[16].mxu1 %vm242_vm2, %v4143_v16 }
 0x2fe   :  { %3643 = vmatprep.mubr.msk.bf16.mxu1 %vm4425_vm0, %v4424_v1 }
 0x305   :  { %3644 = vmatmul.mubr.msk.bf16.gmra.mrb[20].mxu1 %vm242_vm2, %v4144_v17 }
 0x306   :  { %3673 = vmatprep.mubr.msk.bf16.mxu1 %vm4425_vm0, %v4424_v1 }
 0x3c8   :  { %v491_v22 = vpop.f32.mrb[12].mxu1 }
 0x3c9   :  { %v492_v23 = vadd.f32 %v3134_v21, %v491_v22  ;;  %v3637_v24 = vpop.f32.mrb[13].mxu1 }
 0x3ca   :  { %v494_v25 = vpop.f32.mrb[14].mxu1 }
 0x3cb   :  { %v495_v26 = vadd.f32 %v3134_v21, %v494_v25  ;;  %v3638_v27 = vpop.f32.mrb[15].mxu1  ;;  %4239 = vtanh.f32 %v492_v23 }
 0x3cd   :  { %4241 = vtanh.f32 %v495_v26 }
 0x3d0   :  { %v499_v28 = vpop.f32.mrb[16].mxu1 }
 0x3d1   :  { %v500_v29 = vadd.f32 %v3134_v21, %v499_v28  ;;  %v3641_v30 = vpop.f32.mrb[17].mxu1 }
 0x3d2   :  { %v502_v31 = vpop.f32.mrb[18].mxu1 }
 0x3d3   :  { %v503_v32 = vadd.f32 %v3134_v21, %v502_v31  ;;  %v3642_v33 = vpop.f32.mrb[19].mxu1  ;;  %4243 = vtanh.f32 %v500_v29 }
 0x3d5   :  { %4245 = vtanh.f32 %v503_v32  ;;  %v4240_v34 = vpop.eup %4239 }
 0x3d7   :  { %v4242_v35 = vpop.eup %4241 }
 0x3d8   :  { %v538_v36 = vpack.c.bf16 %v4242_v35, %v4240_v34  ;;  %v507_v37 = vpop.f32.mrb[20].mxu1 }
 0x3d9   :  { %v508_v38 = vadd.f32 %v3134_v21, %v507_v37  ;;  %v3645_v39 = vpop.f32.mrb[21].mxu1 }
 0x3da   :  { %v510_v40 = vpop.f32.mrb[22].mxu1  ;;  %3656 = vmatmul.mubr.msk.bf16.vlgmr.msra.gmra.mrb[24].mxu0 %vm357_vm3, %v538_v36 }
 0x3db   :  { %v511_v41 = vadd.f32 %v3134_v21, %v510_v40  ;;  %v3646_v42 = vpop.f32.mrb[23].mxu1  ;;  %3659 = vmatprep.mubr.msk.bf16.mxu0 %vm4425_vm0, %v4424_v1  ;;  %4247 = vtanh.f32 %v508_v38  ;;  %3686 = vmatpush3.bf16.msra.mxu0 %v4152_v10 }
 0x3dc   :  { %3687 = vmatprep.subr.bf16.mxu0 %v4424_v1 }
 0x3dd   :  { %4249 = vtanh.f32 %v511_v41  ;;  %v4244_v43 = vpop.eup %4243 }
 0x3df   :  { %v4246_v44 = vpop.eup %4245  ;;  %3688 = vmatpush3.bf16.msra.mxu0 %v4153_v11 }
 0x3e0   :  { %v539_v45 = vpack.c.bf16 %v4246_v44, %v4244_v43  ;;  %3689 = vmatprep.subr.bf16.mxu0 %v4424_v1 }
 0x3e2   :  { %3660 = vmatmul.mubr.msk.bf16.gmra.mrb[28].mxu0 %vm357_vm3, %v539_v45 }
 0x3e3   :  { %3663 = vmatprep.mubr.msk.bf16.mxu0 %vm4425_vm0, %v4424_v1  ;;  %3690 = vmatpush3.bf16.msra.mxu0 %v4154_v12 }
 0x3e4   :  { %3691 = vmatprep.subr.bf16.mxu0 %v4424_v1 }
 0x3e5   :  { %v4248_v46 = vpop.eup %4247 }
 0x3e7   :  { %v4250_v49 = vpop.eup %4249  ;;  %3692 = vmatpush3.bf16.msra.mxu0 %v4155_v13 }
 0x3e8   :  { %v540_v50 = vpack.c.bf16 %v4250_v49, %v4248_v46  ;;  %3723 = vmatprep.subr.bf16.mxu0 %v4424_v1 }
 0x3ea   :  { %3664 = vmatmul.mubr.msk.bf16.gmra.mrb[32].mxu0 %vm357_vm3, %v540_v50 }
 0x3eb   :  { %3693 = vmatprep.mubr.msk.bf16.mxu0 %vm4425_vm0, %v4424_v1 }
 0x4ad   :  { %v608_v51 = vpop.f32.mrb[24].mxu0 }
 0x4ae   :  { %v3657_v52 = vpop.f32.mrb[25].mxu0 }
 0x4af   :  { %v611_v53 = vpop.f32.mrb[26].mxu0 }
 0x4b0   :  { %v631_v54 = vpack.c.bf16 %v611_v53, %v608_v51  ;;  %v3658_v55 = vpop.f32.mrb[27].mxu0 }
 0x4b2   :  { %3668 = vmatpush3.bf16.msra.mxu1 %v631_v54 }
 0x4b3   :  { %3669 = vmatprep.subr.bf16.mxu1 %v4424_v1 }
 0x4b5   :  { %v616_v58 = vpop.f32.mrb[28].mxu0 }
 0x4b6   :  { %v3661_v61 = vpop.f32.mrb[29].mxu0 }
 0x4b7   :  { %v619_v62 = vpop.f32.mrb[30].mxu0 }
 0x4b8   :  { %v632_v63 = vpack.c.bf16 %v619_v62, %v616_v58  ;;  %v3662_v0 = vpop.f32.mrb[31].mxu0 }
 0x4b9   :  { %v4156_v0 = vld [vmem:[%s4465_s29 + $0x30] sm:$0xff]  }
 0x4ba   :  { %3670 = vmatpush3.bf16.msra.mxu1 %v632_v63 }
 0x4bb   :  { %3671 = vmatprep.subr.bf16.mxu1 %v4424_v1 }
 0x4bd   :  { %v624_v2 = vpop.f32.mrb[32].mxu0 }
 0x4be   :  { %v3665_v3 = vpop.f32.mrb[33].mxu0 }
 0x4bf   :  { %v627_v4 = vpop.f32.mrb[34].mxu0  ;;  %v4158_v3 = vld [vmem:[%s4465_s29 + $0x40] sm:$0xff]  }
 0x4c0   :  { %v633_v5 = vpack.c.bf16 %v627_v4, %v624_v2  ;;  %v3666_v6 = vpop.f32.mrb[35].mxu0  ;;  %v4157_v2 = vld [vmem:[%s4465_s29 + $0x38] sm:$0xff]   ;;  %v4160_v4 = vld [vmem:[%s4460_s25 + $0x68] sm:$0xff]  }
 0x4c1   :  { %v4162_v6 = vld [vmem:[%s4460_s25 + $0x78] sm:$0xff]  }
 0x4c2   :  { %3672 = vmatpush3.bf16.msra.mxu1 %v633_v5  ;;  %v4161_v5 = vld [vmem:[%s4460_s25 + $0x70] sm:$0xff]  }
 0x4c3   :  { %3705 = vmatprep.subr.bf16.mxu1 %v4424_v1 }
 0x4c5   :  { %3674 = vmatmul.mubr.msk.bf16.vlgmr.msra.gmra.mrb[24].mxu1 %vm242_vm2, %v4149_v7  ;;  %v3192_v7 = vld [vmem:[%s4470_s3 + $0x2] ss:$0 sm:$0xff] }
 0x4c6   :  { %3677 = vmatprep.mubr.msk.bf16.mxu1 %vm4425_vm0, %v4424_v1 }
 0x4cd   :  { %3678 = vmatmul.mubr.msk.bf16.gmra.mrb[28].mxu1 %vm242_vm2, %v4150_v8 }
 0x4ce   :  { %3681 = vmatprep.mubr.msk.bf16.mxu1 %vm4425_vm0, %v4424_v1 }
 0x4d5   :  { %3682 = vmatmul.mubr.msk.bf16.gmra.mrb[32].mxu1 %vm242_vm2, %v4151_v9 }
 0x4d6   :  { %3711 = vmatprep.mubr.msk.bf16.mxu1 %vm4425_vm0, %v4424_v1 }
 0x598   :  { %v698_v15 = vpop.f32.mrb[24].mxu1 }
 0x599   :  { %v699_v16 = vadd.f32 %v3163_v14, %v698_v15  ;;  %v3675_v17 = vpop.f32.mrb[25].mxu1 }
 0x59a   :  { %v701_v18 = vpop.f32.mrb[26].mxu1 }
 0x59b   :  { %4251 = vtanh.f32 %v699_v16  ;;  %v702_v19 = vadd.f32 %v3163_v14, %v701_v18  ;;  %v3676_v20 = vpop.f32.mrb[27].mxu1 }
 0x59d   :  { %4253 = vtanh.f32 %v702_v19 }
 0x5a0   :  { %v706_v21 = vpop.f32.mrb[28].mxu1 }
 0x5a1   :  { %v707_v22 = vadd.f32 %v3163_v14, %v706_v21  ;;  %v3679_v23 = vpop.f32.mrb[29].mxu1 }
 0x5a2   :  { %v709_v24 = vpop.f32.mrb[30].mxu1 }
 0x5a3   :  { %4255 = vtanh.f32 %v707_v22  ;;  %v710_v25 = vadd.f32 %v3163_v14, %v709_v24  ;;  %v3680_v26 = vpop.f32.mrb[31].mxu1 }
 0x5a5   :  { %v4252_v27 = vpop.eup %4251  ;;  %4257 = vtanh.f32 %v710_v25 }
 0x5a6   :  { %v4716_v29 = vadd.f32 %v4252_v27, %v4631_v47 }
 0x5a7   :  { %v4254_v28 = vpop.eup %4253 }
 0x5a8   :  { %v4719_v30 = vadd.f32 %v4254_v28, %v4633_v48  ;;  %v714_v31 = vpop.f32.mrb[32].mxu1 }
 0x5a9   :  { %v715_v32 = vadd.f32 %v3163_v14, %v714_v31  ;;  %v3683_v33 = vpop.f32.mrb[33].mxu1 }
 0x5aa   :  { %v751_v34 = vpack.c.bf16 %v4719_v30, %v4716_v29  ;;  %v717_v35 = vpop.f32.mrb[34].mxu1 }
 0x5ab   :  { %4259 = vtanh.f32 %v715_v32  ;;  %v718_v36 = vadd.f32 %v3163_v14, %v717_v35  ;;  %v3684_v37 = vpop.f32.mrb[35].mxu1 }
 0x5ac   :  { %3694 = vmatmul.mubr.msk.bf16.vlgmr.msra.gmra.mrb[36].mxu0 %vm357_vm3, %v751_v34 }
 0x5ad   :  { %v4256_v38 = vpop.eup %4255  ;;  %4261 = vtanh.f32 %v718_v36  ;;  %3697 = vmatprep.mubr.msk.bf16.mxu0 %vm4425_vm0, %v4424_v1 }
 0x5ae   :  { %v4727_v48 = vadd.f32 %v4256_v38, %v4640_v56 }
 0x5af   :  { %v4258_v47 = vpop.eup %4257 }
 0x5b0   :  { %v4730_v39 = vadd.f32 %v4258_v47, %v4642_v57  ;;  %v4159_v57 = vld [vmem:[%s4460_s25 + $0x60] sm:$0xff]   ;;  %s5260_s25 = sld [smem:[#allocation9_spill]] }
 0x5b1   :  { %3724 = vmatpush3.bf16.msra.mxu0 %v4159_v57 }
 0x5b2   :  { %v752_v40 = vpack.c.bf16 %v4730_v39, %v4727_v48  ;;  %3725 = vmatprep.subr.bf16.mxu0 %v4424_v1 }
 0x5b4   :  { %3698 = vmatmul.mubr.msk.bf16.gmra.mrb[40].mxu0 %vm357_vm3, %v752_v40 }
 0x5b5   :  { %v4260_v41 = vpop.eup %4259  ;;  %3701 = vmatprep.mubr.msk.bf16.mxu0 %vm4425_vm0, %v4424_v1  ;;  %3726 = vmatpush3.bf16.msra.mxu0 %v4160_v4 }
 0x5b6   :  { %v4738_v43 = vadd.f32 %v4260_v41, %v4649_v59  ;;  %3727 = vmatprep.subr.bf16.mxu0 %v4424_v1 }
 0x5b7   :  { %v4262_v42 = vpop.eup %4261 }
 0x5b8   :  { %v4741_v44 = vadd.f32 %v4262_v42, %v4651_v60 }
 0x5b9   :  { %3728 = vmatpush3.bf16.msra.mxu0 %v4161_v5 }
 0x5ba   :  { %v753_v56 = vpack.c.bf16 %v4741_v44, %v4738_v43  ;;  %3729 = vmatprep.subr.bf16.mxu0 %v4424_v1 }
 0x5bc   :  { %3702 = vmatmul.mubr.msk.bf16.gmra.mrb[44].mxu0 %vm357_vm3, %v753_v56 }
 0x5bd   :  { %3731 = vmatprep.mubr.msk.bf16.mxu0 %vm4425_vm0, %v4424_v1  ;;  %3730 = vmatpush3.bf16.msra.mxu0 %v4162_v6 }
 0x5be   :  { %3761 = vmatprep.subr.bf16.mxu0 %v4424_v1 }
 0x67f   :  { %v821_v45 = vpop.f32.mrb[36].mxu0 }
 0x680   :  { %v3695_v46 = vpop.f32.mrb[37].mxu0 }
 0x681   :  { %v824_v49 = vpop.f32.mrb[38].mxu0 }
 0x682   :  { %v844_v59 = vpack.c.bf16 %v824_v49, %v821_v45  ;;  %v3696_v50 = vpop.f32.mrb[39].mxu0 }
 0x684   :  { %3706 = vmatpush3.bf16.msra.mxu1 %v844_v59 }
 0x685   :  { %3707 = vmatprep.subr.bf16.mxu1 %v4424_v1 }
 0x687   :  { %v829_v60 = vpop.f32.mrb[40].mxu0 }
 0x688   :  { %v3699_v51 = vpop.f32.mrb[41].mxu0 }
 0x689   :  { %v832_v52 = vpop.f32.mrb[42].mxu0 }
 0x68a   :  { %v845_v53 = vpack.c.bf16 %v832_v52, %v829_v60  ;;  %v3700_v54 = vpop.f32.mrb[43].mxu0  ;;  %v4163_v52 = vld [vmem:[%s4465_s29 + $0x48] sm:$0xff]  }
 0x68b   :  { %v4165_v54 = vld [vmem:[%s4465_s29 + $0x58] sm:$0xff]  }
 0x68c   :  { %3708 = vmatpush3.bf16.msra.mxu1 %v845_v53  ;;  %v4164_v53 = vld [vmem:[%s4465_s29 + $0x50] sm:$0xff]   ;;  %s5261_s29 = sld [smem:[#allocation10_spill]] }
 0x68d   :  { %3709 = vmatprep.subr.bf16.mxu1 %v4424_v1 }
 0x68f   :  { %v837_v55 = vpop.f32.mrb[44].mxu0 }
 0x690   :  { %v3703_v58 = vpop.f32.mrb[45].mxu0 }
 0x691   :  { %v840_v61 = vpop.f32.mrb[46].mxu0  ;;  %v4167_v58 = vld [vmem:[%s4475_s8 + $0x8] sm:$0xff]  }
 0x692   :  { %v846_v62 = vpack.c.bf16 %v840_v61, %v837_v55  ;;  %v3704_v63 = vpop.f32.mrb[47].mxu0  ;;  %v4166_v55 = vld [vmem:[%s4475_s8] sm:$0xff]   ;;  %v4168_v61 = vld [vmem:[%s4475_s8 + $0x10] sm:$0xff]  }
 0x693   :  { %v3221_v63 = vld [vmem:[%s4470_s3 + $0x3] ss:$0 sm:$0xff]  ;;  %s5262_s3 = sld [smem:[#allocation11_spill]] }
 0x694   :  { %3710 = vmatpush3.bf16.msra.mxu1 %v846_v62  ;;  %v4169_v62 = vld [vmem:[%s4475_s8 + $0x18] sm:$0xff]   ;;  %s5263_s8 = sld [smem:[#allocation14_spill]] }
 0x695   :  { %3743 = vmatprep.subr.bf16.mxu1 %v4424_v1 }
 0x697   :  { %3712 = vmatmul.mubr.msk.bf16.vlgmr.msra.gmra.mrb[36].mxu1 %vm242_vm2, %v4156_v0 }
 0x698   :  { %3715 = vmatprep.mubr.msk.bf16.mxu1 %vm4425_vm0, %v4424_v1 }
 0x69f   :  { %3716 = vmatmul.mubr.msk.bf16.gmra.mrb[40].mxu1 %vm242_vm2, %v4157_v2 }
 0x6a0   :  { %3719 = vmatprep.mubr.msk.bf16.mxu1 %vm4425_vm0, %v4424_v1 }
 0x6a7   :  { %3720 = vmatmul.mubr.msk.bf16.gmra.mrb[44].mxu1 %vm242_vm2, %v4158_v3 }
 0x6a8   :  { %3749 = vmatprep.mubr.msk.bf16.mxu1 %vm4425_vm0, %v4424_v1 }
 0x76a   :  { %v911_v8 = vpop.f32.mrb[36].mxu1 }
 0x76b   :  { %v912_v9 = vadd.f32 %v3192_v7, %v911_v8  ;;  %v3713_v10 = vpop.f32.mrb[37].mxu1 }
 0x76c   :  { %v914_v11 = vpop.f32.mrb[38].mxu1 }
 0x76d   :  { %v915_v12 = vadd.f32 %v3192_v7, %v914_v11  ;;  %v3714_v13 = vpop.f32.mrb[39].mxu1  ;;  %4263 = vtanh.f32 %v912_v9 }
 0x76f   :  { %4265 = vtanh.f32 %v915_v12 }
 0x772   :  { %v919_v14 = vpop.f32.mrb[40].mxu1 }
 0x773   :  { %v920_v15 = vadd.f32 %v3192_v7, %v919_v14  ;;  %v3717_v16 = vpop.f32.mrb[41].mxu1 }
 0x774   :  { %v922_v17 = vpop.f32.mrb[42].mxu1 }
 0x775   :  { %v923_v18 = vadd.f32 %v3192_v7, %v922_v17  ;;  %v3718_v19 = vpop.f32.mrb[43].mxu1  ;;  %4267 = vtanh.f32 %v920_v15 }
 0x777   :  { %4269 = vtanh.f32 %v923_v18  ;;  %v4264_v20 = vpop.eup %4263 }
 0x779   :  { %v4266_v21 = vpop.eup %4265 }
 0x77a   :  { %v958_v22 = vpack.c.bf16 %v4266_v21, %v4264_v20  ;;  %v927_v23 = vpop.f32.mrb[44].mxu1  ;;  %v4170_v20 = vld [vmem:[%s4490_s24] sm:$0xff]  }
 0x77b   :  { %v928_v24 = vadd.f32 %v3192_v7, %v927_v23  ;;  %v3721_v25 = vpop.f32.mrb[45].mxu1 }
 0x77c   :  { %v930_v26 = vpop.f32.mrb[46].mxu1  ;;  %3732 = vmatmul.mubr.msk.bf16.vlgmr.msra.gmra.mrb[48].mxu0 %vm357_vm3, %v958_v22 }
 0x77d   :  { %v931_v27 = vadd.f32 %v3192_v7, %v930_v26  ;;  %v3722_v28 = vpop.f32.mrb[47].mxu1  ;;  %3735 = vmatprep.mubr.msk.bf16.mxu0 %vm4425_vm0, %v4424_v1  ;;  %4271 = vtanh.f32 %v928_v24  ;;  %3762 = vmatpush3.bf16.msra.mxu0 %v4166_v55  ;;  %v4175_v55 = vld [vmem:[%s4480_s14 + $0x8] sm:$0xff]  }
 0x77e   :  { %3763 = vmatprep.subr.bf16.mxu0 %v4424_v1  ;;  %v4172_v28 = vld [vmem:[%s4490_s24 + $0x10] sm:$0xff]  }
 0x77f   :  { %4273 = vtanh.f32 %v931_v27  ;;  %v4268_v31 = vpop.eup %4267 }
 0x781   :  { %v4270_v32 = vpop.eup %4269  ;;  %3764 = vmatpush3.bf16.msra.mxu0 %v4167_v58 }
 0x782   :  { %v959_v33 = vpack.c.bf16 %v4270_v32, %v4268_v31  ;;  %3765 = vmatprep.subr.bf16.mxu0 %v4424_v1 }
 0x784   :  { %3736 = vmatmul.mubr.msk.bf16.gmra.mrb[52].mxu0 %vm357_vm3, %v959_v33  ;;  %v4173_v33 = vld [vmem:[%s4490_s24 + $0x18] sm:$0xff]  }
 0x785   :  { %3739 = vmatprep.mubr.msk.bf16.mxu0 %vm4425_vm0, %v4424_v1  ;;  %3766 = vmatpush3.bf16.msra.mxu0 %v4168_v61 }
 0x786   :  { %3767 = vmatprep.subr.bf16.mxu0 %v4424_v1 }
 0x787   :  { %v4272_v34 = vpop.eup %4271 }
 0x789   :  { %v4274_v35 = vpop.eup %4273  ;;  %3768 = vmatpush3.bf16.msra.mxu0 %v4169_v62 }
 0x78a   :  { %v960_v36 = vpack.c.bf16 %v4274_v35, %v4272_v34  ;;  %3799 = vmatprep.subr.bf16.mxu0 %v4424_v1 }
 0x78c   :  { %3740 = vmatmul.mubr.msk.bf16.gmra.mrb[56].mxu0 %vm357_vm3, %v960_v36 }
 0x78d   :  { %3769 = vmatprep.mubr.msk.bf16.mxu0 %vm4425_vm0, %v4424_v1 }
 0x84f   :  { %v1028_v37 = vpop.f32.mrb[48].mxu0 }
 0x850   :  { %v3733_v38 = vpop.f32.mrb[49].mxu0 }
 0x851   :  { %v1031_v47 = vpop.f32.mrb[50].mxu0 }
 0x852   :  { %v1051_v40 = vpack.c.bf16 %v1031_v47, %v1028_v37  ;;  %v3734_v41 = vpop.f32.mrb[51].mxu0 }
 0x854   :  { %3744 = vmatpush3.bf16.msra.mxu1 %v1051_v40 }
 0x855   :  { %3745 = vmatprep.subr.bf16.mxu1 %v4424_v1 }
 0x857   :  { %v1036_v42 = vpop.f32.mrb[52].mxu0 }
 0x858   :  { %v3737_v56 = vpop.f32.mrb[53].mxu0 }
 0x859   :  { %v1039_v57 = vpop.f32.mrb[54].mxu0 }
 0x85a   :  { %v1052_v45 = vpack.c.bf16 %v1039_v57, %v1036_v42  ;;  %v3738_v46 = vpop.f32.mrb[55].mxu0 }
 0x85c   :  { %3746 = vmatpush3.bf16.msra.mxu1 %v1052_v45 }
 0x85d   :  { %3747 = vmatprep.subr.bf16.mxu1 %v4424_v1 }
 0x85f   :  { %v1044_v49 = vpop.f32.mrb[56].mxu0 }
 0x860   :  { %v3741_v59 = vpop.f32.mrb[57].mxu0 }
 0x861   :  { %v1047_v50 = vpop.f32.mrb[58].mxu0 }
 0x862   :  { %v1053_v60 = vpack.c.bf16 %v1047_v50, %v1044_v49  ;;  %v3742_v51 = vpop.f32.mrb[59].mxu0  ;;  %v4174_v50 = vld [vmem:[%s4480_s14] sm:$0xff]  }
 0x864   :  { %3748 = vmatpush3.bf16.msra.mxu1 %v1053_v60 }
 0x865   :  { %3781 = vmatprep.subr.bf16.mxu1 %v4424_v1 }
 0x867   :  { %3750 = vmatmul.mubr.msk.bf16.vlgmr.msra.gmra.mrb[48].mxu1 %vm242_vm2, %v4163_v52 }
 0x868   :  { %3753 = vmatprep.mubr.msk.bf16.mxu1 %vm4425_vm0, %v4424_v1 }
 0x86f   :  { %3754 = vmatmul.mubr.msk.bf16.gmra.mrb[52].mxu1 %vm242_vm2, %v4164_v53 }
 0x870   :  { %3757 = vmatprep.mubr.msk.bf16.mxu1 %vm4425_vm0, %v4424_v1 }
 0x877   :  { %3758 = vmatmul.mubr.msk.bf16.gmra.mrb[56].mxu1 %vm242_vm2, %v4165_v54 }
 0x878   :  { %3787 = vmatprep.mubr.msk.bf16.mxu1 %vm4425_vm0, %v4424_v1 }
 0x93a   :  { %v1118_v0 = vpop.f32.mrb[48].mxu1 }
 0x93b   :  { %v1119_v2 = vadd.f32 %v3221_v63, %v1118_v0  ;;  %v3751_v3 = vpop.f32.mrb[49].mxu1 }
 0x93c   :  { %v1121_v4 = vpop.f32.mrb[50].mxu1 }
 0x93d   :  { %4275 = vtanh.f32 %v1119_v2  ;;  %v1122_v5 = vadd.f32 %v3221_v63, %v1121_v4  ;;  %v3752_v6 = vpop.f32.mrb[51].mxu1  ;;  %v4176_v2 = vld [vmem:[%s4480_s14 + $0x10] sm:$0xff]   ;;  %s5264_s14 = sld [smem:[#allocation12_spill]] }
 0x93f   :  { %4277 = vtanh.f32 %v1122_v5 }
 0x942   :  { %v1126_v7 = vpop.f32.mrb[52].mxu1 }
 0x943   :  { %v1127_v8 = vadd.f32 %v3221_v63, %v1126_v7  ;;  %v3755_v9 = vpop.f32.mrb[53].mxu1 }
 0x944   :  { %v1129_v10 = vpop.f32.mrb[54].mxu1  ;;  %v4178_v9 = vld [vmem:[%s4495_s30 + $0x8] sm:$0xff]  }
 0x945   :  { %4279 = vtanh.f32 %v1127_v8  ;;  %v1130_v11 = vadd.f32 %v3221_v63, %v1129_v10  ;;  %v3756_v12 = vpop.f32.mrb[55].mxu1  ;;  %v4177_v8 = vld [vmem:[%s4495_s30] sm:$0xff]   ;;  %v4179_v10 = vld [vmem:[%s4495_s30 + $0x10] sm:$0xff]  }
 0x946   :  { %v4181_v12 = vld [vmem:[%s4505_s12 + $0x8] sm:$0xff]  }
 0x947   :  { %v4276_v13 = vpop.eup %4275  ;;  %4281 = vtanh.f32 %v1130_v11  ;;  %v4180_v11 = vld [vmem:[%s4505_s12] sm:$0xff]  }
 0x948   :  { %v1147_v15 = vadd.f32 %v4276_v13, %v4716_v29  ;;  %v4171_v29 = vld [vmem:[%s4490_s24 + $0x8] sm:$0xff]   ;;  %s4426_s24 = smov [#allocation2]  }
 0x949   :  { %v4278_v14 = vpop.eup %4277  ;;  %s3072_s30 = sshll.u32 %s4426_s24, 4  ;;  %s3073_s30 = int_to_ptr.vmem [resolvable:$true] %s3072_s30 }
 0x94a   :  { %v1148_v16 = vadd.f32 %v4278_v14, %v4719_v30  ;;  %v1134_v17 = vpop.f32.mrb[56].mxu1  ;;  %s4375_s12 = scalar_lea.vmem %s3073_s30, 32  ;;  %p4376_p1 = scmp.lt.s32.totalorder %s3073_s30, %s3073_s30 }
 0x94b   :  { %v1135_v18 = vadd.f32 %v3221_v63, %v1134_v17  ;;  %v3759_v19 = vpop.f32.mrb[57].mxu1 }
 0x94c   :  { %v1168_v21 = vpack.c.bf16 %v1148_v16, %v1147_v15  ;;  %v1137_v22 = vpop.f32.mrb[58].mxu1 }
 0x94d   :  { %4283 = vtanh.f32 %v1135_v18  ;;  %v1138_v23 = vadd.f32 %v3221_v63, %v1137_v22  ;;  %v3760_v24 = vpop.f32.mrb[59].mxu1 }
 0x94e   :  { %3770 = vmatmul.mubr.msk.bf16.vlgmr.msra.gmra.mrb[60].mxu0 %vm357_vm3, %v1168_v21  ;;  %v3235_v24 = vld [vmem:[%s4485_s19] ss:$0 sm:$0xff]  ;;  %s5265_s19 = sld [smem:[#allocation15_spill]] }
 0x94f   :  { %v4280_v25 = vpop.eup %4279  ;;  %4285 = vtanh.f32 %v1138_v23  ;;  %3800 = vmatpush3.bf16.msra.mxu0 %v4170_v20  ;;  %3773 = vmatprep.mubr.msk.bf16.mxu0 %vm4425_vm0, %v4424_v1 }
 0x950   :  { %3801 = vmatprep.subr.bf16.mxu0 %v4424_v1  ;;  %v1149_v26 = vadd.f32 %v4280_v25, %v4727_v48 }
 0x951   :  { %v4282_v30 = vpop.eup %4281 }
 0x952   :  { %v1150_v27 = vadd.f32 %v4282_v30, %v4730_v39  ;;  %v4875_v30 = vld [vmem:[%s4500_s6] ss:$0 sm:$0xff]  ;;  %s4371_s6 = scalar_lea.vmem %s3073_s30, 16 }
 0x953   :  { %3802 = vmatpush3.bf16.msra.mxu0 %v4171_v29  ;;  %p4372_p0 = scmp.ne.s32.totalorder %s3073_s30, %s4371_s6  ;;  %p4377_p2 = scmp.lt.s32.totalorder %s4375_s12, %s4371_s6 }
 0x954   :  { %v1169_v31 = vpack.c.bf16 %v1150_v27, %v1149_v26  ;;  %3803 = vmatprep.subr.bf16.mxu0 %v4424_v1 }
 0x955   :  { %p4378_p3 = por %p4377_p2, %p4376_p1 }
 0x956   :  { %3774 = vmatmul.mubr.msk.bf16.gmra.mrb[64].mxu0 %vm357_vm3, %v1169_v31 }
 0x957   :  { %v4284_v32 = vpop.eup %4283  ;;  %3777 = vmatprep.mubr.msk.bf16.mxu0 %vm4425_vm0, %v4424_v1  ;;  %3804 = vmatpush3.bf16.msra.mxu0 %v4172_v28  ;;  %p4379_p4 = pnand %p4378_p3, %p4372_p0 }
 0x958   :  { %3805 = vmatprep.subr.bf16.mxu0 %v4424_v1  ;;  %v1151_v48 = vadd.f32 %v4284_v32, %v4738_v43 }
 0x959   :  { %v4286_v34 = vpop.eup %4285 }
 0x95a   :  { %v1152_v39 = vadd.f32 %v4286_v34, %v4741_v44 }
 0x95b   :  { %3806 = vmatpush3.bf16.msra.mxu0 %v4173_v33 }
 0x95c   :  { %v1170_v35 = vpack.c.bf16 %v1152_v39, %v1151_v48  ;;  %3837 = vmatprep.subr.bf16.mxu0 %v4424_v1 }
 0x95e   :  { %3778 = vmatmul.mubr.msk.bf16.gmra.mrb[68].mxu0 %vm357_vm3, %v1170_v35 }
 0x95f   :  { %3807 = vmatprep.mubr.msk.bf16.mxu0 %vm4425_vm0, %v4424_v1 }
 0x966   :  { %3808 = vmatmul.mubr.msk.bf16.vlgmr.msra.gmra.mrb[72].mxu0 %vm357_vm3, %v1168_v21 }
 0x967   :  { %3811 = vmatprep.mubr.msk.bf16.mxu0 %vm4425_vm0, %v4424_v1  ;;  %3838 = vmatpush3.bf16.msra.mxu0 %v4180_v11  ;;  %v1538_v11 = vld [vmem:[%s5256_s0 + $0x8] sm:$0xff] }
 0x968   :  { %3839 = vmatprep.subr.bf16.mxu0 %v4424_v1 }
 0x96b   :  { %3840 = vmatpush3.bf16.msra.mxu0 %v4181_v12 }
 0x96c   :  { %3871 = vmatprep.subr.bf16.mxu0 %v4424_v1 }
 0x96e   :  { %3812 = vmatmul.mubr.msk.bf16.gmra.mrb[76].mxu0 %vm357_vm3, %v1169_v31 }
 0x96f   :  { %3815 = vmatprep.mubr.msk.bf16.mxu0 %vm4425_vm0, %v4424_v1 }
 0x976   :  { %3816 = vmatmul.mubr.msk.bf16.gmra.mrb[80].mxu0 %vm357_vm3, %v1170_v35 }
 0x977   :  { %3841 = vmatprep.mubr.msk.bf16.mxu0 %vm4425_vm0, %v4424_v1 }
 0xa21   :  { %v1238_v43 = vpop.f32.mrb[60].mxu0 }
 0xa22   :  { %v3771_v44 = vpop.f32.mrb[61].mxu0 }
 0xa23   :  { %v1241_v36 = vpop.f32.mrb[62].mxu0 }
 0xa24   :  { %v1261_v37 = vpack.c.bf16 %v1241_v36, %v1238_v43  ;;  %v3772_v38 = vpop.f32.mrb[63].mxu0 }
 0xa26   :  { %3782 = vmatpush3.bf16.msra.mxu1 %v1261_v37 }
 0xa27   :  { %3783 = vmatprep.subr.bf16.mxu1 %v4424_v1 }
 0xa29   :  { %v1246_v47 = vpop.f32.mrb[64].mxu0 }
 0xa2a   :  { %v3775_v40 = vpop.f32.mrb[65].mxu0 }
 0xa2b   :  { %v1249_v41 = vpop.f32.mrb[66].mxu0 }
 0xa2c   :  { %v1262_v42 = vpack.c.bf16 %v1249_v41, %v1246_v47  ;;  %v3776_v56 = vpop.f32.mrb[67].mxu0 }
 0xa2e   :  { %3784 = vmatpush3.bf16.msra.mxu1 %v1262_v42 }
 0xa2f   :  { %3785 = vmatprep.subr.bf16.mxu1 %v4424_v1 }
 0xa31   :  { %v1254_v57 = vpop.f32.mrb[68].mxu0 }
 0xa32   :  { %v3779_v45 = vpop.f32.mrb[69].mxu0 }
 0xa33   :  { %v1257_v46 = vpop.f32.mrb[70].mxu0 }
 0xa34   :  { %v1263_v49 = vpack.c.bf16 %v1257_v46, %v1254_v57  ;;  %v3780_v59 = vpop.f32.mrb[71].mxu0 }
 0xa36   :  { %3786 = vmatpush3.bf16.msra.mxu1 %v1263_v49 }
 0xa37   :  { %3819 = vmatprep.subr.bf16.mxu1 %v4424_v1 }
 0xa39   :  { %3788 = vmatmul.mubr.msk.bf16.vlgmr.msra.gmra.mrb[60].mxu1 %vm242_vm2, %v4174_v50  ;;  %v1424_v60 = vpop.f32.mrb[72].mxu0 }
 0xa3a   :  { %v3809_v51 = vpop.f32.mrb[73].mxu0  ;;  %3791 = vmatprep.mubr.msk.bf16.mxu1 %vm4425_vm0, %v4424_v1 }
 0xa3b   :  { %v1427_v52 = vpop.f32.mrb[74].mxu0 }
 0xa3c   :  { %v1447_v53 = vpack.c.bf16 %v1427_v52, %v1424_v60  ;;  %v3810_v54 = vpop.f32.mrb[75].mxu0 }
 0xa3e   :  { %3820 = vmatpush3.bf16.msra.mxu1 %v1447_v53 }
 0xa3f   :  { %3821 = vmatprep.subr.bf16.mxu1 %v4424_v1 }
 0xa41   :  { %3792 = vmatmul.mubr.msk.bf16.gmra.mrb[64].mxu1 %vm242_vm2, %v4175_v55  ;;  %v1432_v58 = vpop.f32.mrb[76].mxu0 }
 0xa42   :  { %v3813_v61 = vpop.f32.mrb[77].mxu0  ;;  %3795 = vmatprep.mubr.msk.bf16.mxu1 %vm4425_vm0, %v4424_v1 }
 0xa43   :  { %v1435_v62 = vpop.f32.mrb[78].mxu0 }
 0xa44   :  { %v1448_v63 = vpack.c.bf16 %v1435_v62, %v1432_v58  ;;  %v3814_v0 = vpop.f32.mrb[79].mxu0 }
 0xa46   :  { %3822 = vmatpush3.bf16.msra.mxu1 %v1448_v63 }
 0xa47   :  { %3823 = vmatprep.subr.bf16.mxu1 %v4424_v1 }
 0xa49   :  { %3796 = vmatmul.mubr.msk.bf16.gmra.mrb[68].mxu1 %vm242_vm2, %v4176_v2  ;;  %v1440_v3 = vpop.f32.mrb[80].mxu0 }
 0xa4a   :  { %v3817_v4 = vpop.f32.mrb[81].mxu0  ;;  %3825 = vmatprep.mubr.msk.bf16.mxu1 %vm4425_vm0, %v4424_v1 }
 0xa4b   :  { %v1443_v5 = vpop.f32.mrb[82].mxu0 }
 0xa4c   :  { %v1449_v6 = vpack.c.bf16 %v1443_v5, %v1440_v3  ;;  %v3818_v7 = vpop.f32.mrb[83].mxu0  ;;  %v1537_v5 = vld [vmem:[%s5256_s0] sm:$0xff] }
 0xa4e   :  { %3824 = vmatpush3.bf16.msra.mxu1 %v1449_v6 }
 0xa4f   :  { %3853 = vmatprep.subr.bf16.mxu1 %v4424_v1 }
 0xa51   :  { %3826 = vmatmul.mubr.msk.bf16.vlgmr.msra.gmra.mrb[72].mxu1 %vm242_vm2, %v4177_v8 }
 0xa52   :  { %3829 = vmatprep.mubr.msk.bf16.mxu1 %vm4425_vm0, %v4424_v1 }
 0xa59   :  { %3830 = vmatmul.mubr.msk.bf16.gmra.mrb[76].mxu1 %vm242_vm2, %v4178_v9 }
 0xa5a   :  { %3833 = vmatprep.mubr.msk.bf16.mxu1 %vm4425_vm0, %v4424_v1 }
 0xa61   :  { %3834 = vmatmul.mubr.msk.bf16.gmra.mrb[80].mxu1 %vm242_vm2, %v4179_v10 }
 0xa62   :  { %3859 = vmatprep.mubr.msk.bf16.mxu1 %vm4425_vm0, %v4424_v1 }
 0xb0c   :  { %v1328_v13 = vpop.f32.mrb[60].mxu1 }
 0xb0d   :  { %v3789_v14 = vpop.f32.mrb[61].mxu1  ;;  %v4872_v29 = vadd.f32 %v3235_v24, %v1328_v13 }
 0xb0e   :  { %v1331_v15 = vpop.f32.mrb[62].mxu1 }
 0xb0f   :  { %v3790_v16 = vpop.f32.mrb[63].mxu1  ;;  %v1585_v31 = vmul.f32 %v4872_v29, %v4872_v29  ;;  %v4880_v32 = vadd.f32 %v3235_v24, %v1331_v15 }
 0xb11   :  { %v1586_v38 = vmul.f32 %v4880_v32, %v4880_v32 }
 0xb14   :  { %v1336_v17 = vpop.f32.mrb[64].mxu1 }
 0xb15   :  { %v3793_v18 = vpop.f32.mrb[65].mxu1  ;;  %v4885_v47 = vadd.f32 %v3235_v24, %v1336_v17 }
 0xb16   :  { %v1339_v19 = vpop.f32.mrb[66].mxu1 }
 0xb17   :  { %v3794_v20 = vpop.f32.mrb[67].mxu1  ;;  %v4887_v56 = vadd.f32 %v3235_v24, %v1339_v19  ;;  %v4892_v59 = vmul.f32 %v4885_v47, %v4885_v47 }
 0xb19   :  { %v4897_v55 = vmul.f32 %v4887_v56, %v4887_v56 }
 0xb1c   :  { %v1344_v21 = vpop.f32.mrb[68].mxu1 }
 0xb1d   :  { %v3797_v22 = vpop.f32.mrb[69].mxu1  ;;  %v4900_v63 = vadd.f32 %v3235_v24, %v1344_v21 }
 0xb1e   :  { %v1347_v23 = vpop.f32.mrb[70].mxu1 }
 0xb1f   :  { %v3798_v25 = vpop.f32.mrb[71].mxu1  ;;  %v4902_v0 = vadd.f32 %v3235_v24, %v1347_v23  ;;  %v1589_v15 = vmul.f32 %v4900_v63, %v4900_v63 }
 0xb21   :  { %v1590_v16 = vmul.f32 %v4902_v0, %v4902_v0 }
 0xb24   :  { %v1514_v26 = vpop.f32.mrb[72].mxu1 }
 0xb25   :  { %v1515_v27 = vadd.f32 %v4875_v30, %v1514_v26  ;;  %v3827_v28 = vpop.f32.mrb[73].mxu1 }
 0xb26   :  { %v1517_v33 = vpop.f32.mrb[74].mxu1 }
 0xb27   :  { %v1543_v34 = vmul.f32 0.5, %v1515_v27  ;;  %v1579_v48 = vadd.f32 1.0, %v1515_v27  ;;  %v1597_v39 = vmul.f32 1.442695, %v1515_v27  ;;  %v1518_v35 = vadd.f32 %v4875_v30, %v1517_v33  ;;  %v3828_v43 = vpop.f32.mrb[75].mxu1 }
 0xb29   :  { %v1549_v44 = vmul.f32 1.442695, %v1543_v34  ;;  %v1591_v36 = vsub.f32 %v1579_v48, %v1585_v31  ;;  %4287 = vpow2.f32 %v1597_v39  ;;  %v1544_v37 = vmul.f32 0.5, %v1518_v35 }
 0xb2a   :  { %v1580_v40 = vadd.f32 1.0, %v1518_v35  ;;  %v1599_v41 = vmul.f32 1.442695, %v1518_v35 }
 0xb2b   :  { %4289 = vpow2.f32 %v1549_v44  ;;  %v1551_v42 = vmul.f32 1.442695, %v1544_v37  ;;  %v1539_v44 = vld [vmem:[%s5256_s0 + $0x10] sm:$0xff] }
 0xb2c   :  { %v1592_v57 = vsub.f32 %v1580_v40, %v1586_v38  ;;  %4291 = vpow2.f32 %v1599_v41  ;;  %v1522_v45 = vpop.f32.mrb[76].mxu1  ;;  %v1540_v41 = vld [vmem:[%s5256_s0 + $0x18] sm:$0xff] }
 0xb2d   :  { %4293 = vpow2.f32 %v1551_v42  ;;  %v1523_v46 = vadd.f32 %v4875_v30, %v1522_v45  ;;  %v3831_v49 = vpop.f32.mrb[77].mxu1 }
 0xb2e   :  { %v1525_v50 = vpop.f32.mrb[78].mxu1 }
 0xb2f   :  { %v1545_v60 = vmul.f32 0.5, %v1523_v46  ;;  %v1581_v51 = vadd.f32 1.0, %v1523_v46  ;;  %v1601_v52 = vmul.f32 1.442695, %v1523_v46  ;;  %v1526_v53 = vadd.f32 %v4875_v30, %v1525_v50  ;;  %v3832_v54 = vpop.f32.mrb[79].mxu1 }
 0xb31   :  { %v1553_v58 = vmul.f32 1.442695, %v1545_v60  ;;  %v1593_v61 = vsub.f32 %v1581_v51, %v4892_v59  ;;  %4295 = vpow2.f32 %v1601_v52  ;;  %v1546_v62 = vmul.f32 0.5, %v1526_v53 }
 0xb32   :  { %v1582_v2 = vadd.f32 1.0, %v1526_v53  ;;  %v1603_v3 = vmul.f32 1.442695, %v1526_v53 }
 0xb33   :  { %v4288_v4 = vpop.eup %4287  ;;  %4297 = vpow2.f32 %v1553_v58  ;;  %v1555_v6 = vmul.f32 1.442695, %v1546_v62 }
 0xb34   :  { %v1609_v7 = vsub.f32 %v1591_v36, %v4288_v4  ;;  %v1594_v8 = vsub.f32 %v1582_v2, %v4897_v55  ;;  %4299 = vpow2.f32 %v1603_v3  ;;  %v1530_v9 = vpop.f32.mrb[80].mxu1  ;;  %v1541_v55 = vld [vmem:[%s5256_s0 + $0x20] sm:$0xff]  ;;  %v1542_v3 = vld [vmem:[%s5256_s0 + $0x28] sm:$0xff] }
 0xb35   :  { %v4290_v10 = vpop.eup %4289  ;;  %4301 = vpow2.f32 %v1555_v6  ;;  %v1531_v12 = vadd.f32 %v4875_v30, %v1530_v9  ;;  %v3835_v13 = vpop.f32.mrb[81].mxu1 }
 0xb36   :  { %v4292_v14 = vpop.eup %4291  ;;  %v1561_v17 = vmul.f32 %v4290_v10, %v1537_v5  ;;  %v1533_v18 = vpop.f32.mrb[82].mxu1  ;;  %v1615_v28 = vsel %vm151_vm1, %v1609_v7, 0.0  ;;  %v4185_v13 = vld [vmem:[%s5257_s5] sm:$0xff]  }
 0xb37   :  { %v4294_v19 = vpop.eup %4293  ;;  %v1610_v20 = vsub.f32 %v1592_v57, %v4292_v14  ;;  %v1547_v21 = vmul.f32 0.5, %v1531_v12  ;;  %v1583_v22 = vadd.f32 1.0, %v1531_v12  ;;  %v1605_v23 = vmul.f32 1.442695, %v1531_v12  ;;  %v3836_v24 = vpop.f32.mrb[83].mxu1 }
 0xb38   :  { %v1567_v25 = vadd.f32 %v1561_v17, %v4872_v29  ;;  %v1562_v26 = vmul.f32 %v4294_v19, %v1538_v11  ;;  %v1534_v27 = vadd.f32 %v4875_v30, %v1533_v18 }
 0xb39   :  { %v1557_v31 = vmul.f32 1.442695, %v1547_v21  ;;  %4303 = vpow2.f32 %v1605_v23  ;;  %v1595_v33 = vsub.f32 %v1583_v22, %v1589_v15  ;;  %v1616_v34 = vsel %vm151_vm1, %v1610_v20, 0.0 }
 0xb3a   :  { %1573 = vst.msk [vmem:[%s4565_s9] sm:$0xff] %vm151_vm1, %v1567_v25  ;;  %v1568_v48 = vadd.f32 %v1562_v26, %v4880_v32  ;;  %v1548_v39 = vmul.f32 0.5, %v1534_v27  ;;  %v1584_v35 = vadd.f32 1.0, %v1534_v27  ;;  %v1607_v43 = vmul.f32 1.442695, %v1534_v27 }
 0xb3b   :  { %v4296_v29 = vpop.eup %4295  ;;  %4305 = vpow2.f32 %v1557_v31  ;;  %v1617_v36 = vadd.f32 %v1616_v34, %v1615_v28 }
 0xb3c   :  { %1574 = vst.msk [vmem:[%s4565_s9 + $0x8] sm:$0xff] %vm151_vm1, %v1568_v48  ;;  %v1559_v30 = vmul.f32 1.442695, %v1548_v39  ;;  %4307 = vpow2.f32 %v1607_v43  ;;  %v1650_v37 = vpack.c.bf16 %v1568_v48, %v1567_v25  ;;  %v1596_v38 = vsub.f32 %v1584_v35, %v1590_v16  ;;  %v4182_v43 = vld [vmem:[%s5258_s17] sm:$0xff]  }
 0xb3d   :  { %v4298_v40 = vpop.eup %4297  ;;  %v1611_v42 = vsub.f32 %v1593_v61, %v4296_v29  ;;  %v4183_v29 = vld [vmem:[%s5258_s17 + $0x8] sm:$0xff]  }
 0xb3e   :  { %v4300_v57 = vpop.eup %4299  ;;  %4309 = vpow2.f32 %v1559_v30  ;;  %3842 = vmatmul.mubr.msk.bf16.vlgmr.msra.gmra.mrb[84].mxu0 %vm151_vm1, %v1650_v37  ;;  %v1563_v32 = vmul.f32 %v4298_v40, %v1539_v44  ;;  %v4184_v44 = vld [vmem:[%s5258_s17 + $0x10] sm:$0xff]   ;;  %v4188_v37 = vld [vmem:[%s5257_s5 + $0x18] sm:$0xff]  }
 0xb3f   :  { %v4302_v45 = vpop.eup %4301  ;;  %3845 = vmatprep.mubr.msk.bf16.mxu0 %vm4425_vm0, %v4424_v1  ;;  %v1612_v46 = vsub.f32 %v1594_v8, %v4300_v57  ;;  %v1618_v49 = vsel %vm151_vm1, %v1611_v42, 0.0  ;;  %3872 = vmatpush3.bf16.msra.mxu0 %v4185_v13  ;;  %v4187_v30 = vld [vmem:[%s5257_s5 + $0x10] sm:$0xff]  }
 0xb40   :  { %v1564_v59 = vmul.f32 %v4302_v45, %v1540_v41  ;;  %v1569_v50 = vadd.f32 %v1563_v32, %v4885_v47  ;;  %v1619_v60 = vadd.f32 %v1618_v49, %v1617_v36  ;;  %3873 = vmatprep.subr.bf16.mxu0 %v4424_v1  ;;  %v4186_v36 = vld [vmem:[%s5257_s5 + $0x8] sm:$0xff]  }
 0xb41   :  { %v1620_v51 = vsel %vm151_vm1, %v1612_v46, 0.0 }
 0xb42   :  { %v1570_v52 = vadd.f32 %v1564_v59, %v4887_v56  ;;  %1575 = vst.msk [vmem:[%s4565_s9 + $0x10] sm:$0xff] %vm151_vm1, %v1569_v50  ;;  %v1621_v53 = vadd.f32 %v1620_v51, %v1619_v60 }
 0xb43   :  { %v4304_v54 = vpop.eup %4303  ;;  %3874 = vmatpush3.bf16.msra.mxu0 %v4186_v36 }
 0xb44   :  { %1576 = vst.msk [vmem:[%s4565_s9 + $0x18] sm:$0xff] %vm151_vm1, %v1570_v52  ;;  %v1651_v58 = vpack.c.bf16 %v1570_v52, %v1569_v50  ;;  %v1613_v61 = vsub.f32 %v1595_v33, %v4304_v54  ;;  %3875 = vmatprep.subr.bf16.mxu0 %v4424_v1 }
 0xb45   :  { %v4306_v62 = vpop.eup %4305 }
 0xb46   :  { %v4308_v2 = vpop.eup %4307  ;;  %3846 = vmatmul.mubr.msk.bf16.gmra.mrb[88].mxu0 %vm151_vm1, %v1651_v58  ;;  %v1622_v47 = vsel %vm151_vm1, %v1613_v61, 0.0  ;;  %v1565_v4 = vmul.f32 %v4306_v62, %v1541_v55 }
 0xb47   :  { %v1614_v56 = vsub.f32 %v1596_v38, %v4308_v2  ;;  %v1623_v5 = vadd.f32 %v1622_v47, %v1621_v53  ;;  %3849 = vmatprep.mubr.msk.bf16.mxu0 %vm4425_vm0, %v4424_v1  ;;  %3876 = vmatpush3.bf16.msra.mxu0 %v4187_v30  ;;  %v3261_v38 = vld [vmem:[%s5259_s21] ss:$0 sm:$0xff] }
 0xb48   :  { %v4310_v6 = vpop.eup %4309  ;;  %v1571_v7 = vadd.f32 %v1565_v4, %v4900_v63  ;;  %3877 = vmatprep.subr.bf16.mxu0 %v4424_v1 }
 0xb49   :  { %v1624_v8 = vsel %vm151_vm1, %v1614_v56, 0.0  ;;  %v1566_v9 = vmul.f32 %v4310_v6, %v1542_v3 }
 0xb4a   :  { %v1625_v10 = vadd.f32 %v1624_v8, %v1623_v5  ;;  %1577 = vst.msk [vmem:[%s4565_s9 + $0x20] sm:$0xff] %vm151_vm1, %v1571_v7  ;;  %v4192_v8 = vld [vmem:[%s5257_s5 + $0x20] sm:$0xff]  }
 0xb4b   :  { %v1572_v11 = vadd.f32 %v1566_v9, %v4902_v0  ;;  %3878 = vmatpush3.bf16.msra.mxu0 %v4188_v37 }
 0xb4c   :  { %1626 = vadd.xlane.f32.xlu0 %v1625_v10  ;;  %3909 = vmatprep.subr.bf16.mxu0 %v4424_v1 }
 0xb4d   :  { %1578 = vst.msk [vmem:[%s4565_s9 + $0x28] sm:$0xff] %vm151_vm1, %v1572_v11  ;;  %v1652_v12 = vpack.c.bf16 %v1572_v11, %v1571_v7 }
 0xb4f   :  { %3850 = vmatmul.mubr.msk.bf16.gmra.mrb[92].mxu0 %vm151_vm1, %v1652_v12 }
 0xb50   :  { %3879 = vmatprep.mubr.msk.bf16.mxu0 %vm4425_vm0, %v4424_v1 }
 0xbd9   :  { %v1627_v63 = vpop.xlane.xlu0 %1626 }
 0xbda   :  { %v1628_v14 = vrot.slane %v1627_v63, 4 }
 0xbdc   :  { %v1629_v15 = vadd.f32 %v1628_v14, %v1627_v63 }
 0xbde   :  { %v1630_v16 = vrot.slane %v1629_v15, 2 }
 0xbe0   :  { %v1631_v17 = vadd.f32 %v1630_v16, %v1629_v15 }
 0xbe2   :  { %v1632_v18 = vrot.slane %v1631_v17, 1 }
 0xbe4   :  { %v1633_v0 = vadd.f32 %v1632_v18, %v1631_v17 }
 0xbe6   :  { %4099 = vpush %v1633_v0 }
 0xc11   :  { %v1708_v19 = vpop.f32.mrb[84].mxu0 }
 0xc12   :  { %v3843_v20 = vpop.f32.mrb[85].mxu0 }
 0xc13   :  { %v1711_v21 = vpop.f32.mrb[86].mxu0 }
 0xc14   :  { %v1731_v22 = vpack.c.bf16 %v1711_v21, %v1708_v19  ;;  %v3844_v23 = vpop.f32.mrb[87].mxu0 }
 0xc15   :  { %v4190_v23 = vld [vmem:[%s5260_s25 + $0x8] sm:$0xff]  }
 0xc16   :  { %3854 = vmatpush3.bf16.msra.mxu1 %v1731_v22  ;;  %v4189_v22 = vld [vmem:[%s5260_s25] sm:$0xff]  }
 0xc17   :  { %s4100_s9 = spop %4099  ;;  %3855 = vmatprep.subr.bf16.mxu1 %v4424_v1 }
 0xc18   :  { %s1635_s13 = smul.f32 -0.5, %s4100_s9 }
 0xc19   :  { %v1716_v24 = vpop.f32.mrb[88].mxu0 }
 0xc1a   :  { %v1636_v25 = vstv %s1635_s13  ;;  %v3847_v26 = vpop.f32.mrb[89].mxu0 }
 0xc1b   :  { %1638 = vst.msk [vmem:[#allocation2] sm:$0x1] %vm1637_vm4, %v1636_v25  ;;  %v1719_v27 = vpop.f32.mrb[90].mxu0  ;;  %v4193_v25 = vld [vmem:[%s5257_s5 + $0x28] sm:$0xff]   ;;  %v4194_v26 = vld [vmem:[%s5257_s5 + $0x30] sm:$0xff]  }
 0xc1c   :  { %v1732_v28 = vpack.c.bf16 %v1719_v27, %v1716_v24  ;;  %v3848_v31 = vpop.f32.mrb[91].mxu0  ;;  %v4191_v24 = vld [vmem:[%s5260_s25 + $0x10] sm:$0xff]   ;;  %v4195_v27 = vld [vmem:[%s5257_s5 + $0x38] sm:$0xff]  }
 0xc1e   :  { %3856 = vmatpush3.bf16.msra.mxu1 %v1732_v28  ;;  %v3275_v28 = vld [vmem:[%s5261_s29] ss:$0 sm:$0xff] }
 0xc1f   :  { %3857 = vmatprep.subr.bf16.mxu1 %v4424_v1 }
 0xc22   :  { %v1724_v33 = vpop.f32.mrb[92].mxu0 }
 0xc23   :  { %v3851_v34 = vpop.f32.mrb[93].mxu0 }
 0xc24   :  { %v1727_v48 = vpop.f32.mrb[94].mxu0 }
 0xc25   :  { %v1733_v39 = vpack.c.bf16 %v1727_v48, %v1724_v33  ;;  %v3852_v35 = vpop.f32.mrb[95].mxu0 }
 0xc27   :  { %3858 = vmatpush3.bf16.msra.mxu1 %v1733_v39 }
 0xc28   :  { %3891 = vmatprep.subr.bf16.mxu1 %v4424_v1 }
 0xc2a   :  { %3860 = vmatmul.mubr.msk.bf16.vlgmr.msra.gmra.mrb[84].mxu1 %vm242_vm2, %v4182_v43 }
 0xc2b   :  { %3863 = vmatprep.mubr.msk.bf16.mxu1 %vm4425_vm0, %v4424_v1 }
 0xc32   :  { %3864 = vmatmul.mubr.msk.bf16.gmra.mrb[88].mxu1 %vm242_vm2, %v4183_v29 }
 0xc33   :  { %3867 = vmatprep.mubr.msk.bf16.mxu1 %vm4425_vm0, %v4424_v1 }
 0xc3a   :  { %3868 = vmatmul.mubr.msk.bf16.gmra.mrb[92].mxu1 %vm242_vm2, %v4184_v44 }
 0xc3b   :  { %3897 = vmatprep.mubr.msk.bf16.mxu1 %vm4425_vm0, %v4424_v1 }
 0xcfd   :  { %v1798_v40 = vpop.f32.mrb[84].mxu1 }
 0xcfe   :  { %v1799_v41 = vadd.f32 %v3261_v38, %v1798_v40  ;;  %v3861_v42 = vpop.f32.mrb[85].mxu1 }
 0xcff   :  { %v1801_v57 = vpop.f32.mrb[86].mxu1 }
 0xd00   :  { %v1802_v32 = vadd.f32 %v3261_v38, %v1801_v57  ;;  %v3862_v45 = vpop.f32.mrb[87].mxu1  ;;  %4311 = vtanh.f32 %v1799_v41 }
 0xd02   :  { %4313 = vtanh.f32 %v1802_v32 }
 0xd05   :  { %v1806_v46 = vpop.f32.mrb[88].mxu1 }
 0xd06   :  { %v1807_v49 = vadd.f32 %v3261_v38, %v1806_v46  ;;  %v3865_v59 = vpop.f32.mrb[89].mxu1 }
 0xd07   :  { %v1809_v50 = vpop.f32.mrb[90].mxu1 }
 0xd08   :  { %v1810_v60 = vadd.f32 %v3261_v38, %v1809_v50  ;;  %v3866_v51 = vpop.f32.mrb[91].mxu1  ;;  %4315 = vtanh.f32 %v1807_v49 }
 0xd0a   :  { %4317 = vtanh.f32 %v1810_v60  ;;  %v4974_v52 = vpop.eup %4311 }
 0xd0c   :  { %v4976_v53 = vpop.eup %4313 }
 0xd0d   :  { %v1842_v54 = vpack.c.bf16 %v4976_v53, %v4974_v52  ;;  %v1814_v55 = vpop.f32.mrb[92].mxu1 }
 0xd0e   :  { %v1815_v58 = vadd.f32 %v3261_v38, %v1814_v55  ;;  %v3869_v61 = vpop.f32.mrb[93].mxu1 }
 0xd0f   :  { %v1817_v62 = vpop.f32.mrb[94].mxu1  ;;  %3880 = vmatmul.mubr.msk.bf16.vlgmr.msra.gmra.mrb[96].mxu0 %vm357_vm3, %v1842_v54 }
 0xd10   :  { %v1818_v2 = vadd.f32 %v3261_v38, %v1817_v62  ;;  %v3870_v47 = vpop.f32.mrb[95].mxu1  ;;  %3883 = vmatprep.mubr.msk.bf16.mxu0 %vm4425_vm0, %v4424_v1  ;;  %4319 = vtanh.f32 %v1815_v58  ;;  %3910 = vmatpush3.bf16.msra.mxu0 %v4192_v8 }
 0xd11   :  { %3911 = vmatprep.subr.bf16.mxu0 %v4424_v1 }
 0xd12   :  { %4321 = vtanh.f32 %v1818_v2  ;;  %v4983_v3 = vpop.eup %4315 }
 0xd14   :  { %v4985_v4 = vpop.eup %4317  ;;  %3912 = vmatpush3.bf16.msra.mxu0 %v4193_v25 }
 0xd15   :  { %v1843_v56 = vpack.c.bf16 %v4985_v4, %v4983_v3  ;;  %3913 = vmatprep.subr.bf16.mxu0 %v4424_v1 }
 0xd17   :  { %3884 = vmatmul.mubr.msk.bf16.gmra.mrb[100].mxu0 %vm357_vm3, %v1843_v56 }
 0xd18   :  { %3887 = vmatprep.mubr.msk.bf16.mxu0 %vm4425_vm0, %v4424_v1  ;;  %3914 = vmatpush3.bf16.msra.mxu0 %v4194_v26 }
 0xd19   :  { %3915 = vmatprep.subr.bf16.mxu0 %v4424_v1 }
 0xd1a   :  { %v4992_v5 = vpop.eup %4319 }
 0xd1c   :  { %v4994_v6 = vpop.eup %4321  ;;  %3916 = vmatpush3.bf16.msra.mxu0 %v4195_v27 }
 0xd1d   :  { %v1844_v7 = vpack.c.bf16 %v4994_v6, %v4992_v5  ;;  %3947 = vmatprep.subr.bf16.mxu0 %v4424_v1 }
 0xd1f   :  { %3888 = vmatmul.mubr.msk.bf16.gmra.mrb[104].mxu0 %vm357_vm3, %v1844_v7 }
 0xd20   :  { %3917 = vmatprep.mubr.msk.bf16.mxu0 %vm4425_vm0, %v4424_v1 }
 0xde2   :  { %v1912_v9 = vpop.f32.mrb[96].mxu0 }
 0xde3   :  { %v3881_v10 = vpop.f32.mrb[97].mxu0 }
 0xde4   :  { %v1915_v11 = vpop.f32.mrb[98].mxu0 }
 0xde5   :  { %v1935_v12 = vpack.c.bf16 %v1915_v11, %v1912_v9  ;;  %v3882_v13 = vpop.f32.mrb[99].mxu0 }
 0xde7   :  { %3892 = vmatpush3.bf16.msra.mxu1 %v1935_v12 }
 0xde8   :  { %3893 = vmatprep.subr.bf16.mxu1 %v4424_v1 }
 0xdea   :  { %v1920_v63 = vpop.f32.mrb[100].mxu0 }
 0xdeb   :  { %v3885_v14 = vpop.f32.mrb[101].mxu0 }
 0xdec   :  { %v1923_v15 = vpop.f32.mrb[102].mxu0 }
 0xded   :  { %v1936_v16 = vpack.c.bf16 %v1923_v15, %v1920_v63  ;;  %v3886_v17 = vpop.f32.mrb[103].mxu0  ;;  %v4196_v15 = vld [vmem:[%s5260_s25 + $0x18] sm:$0xff]  }
 0xdee   :  { %v4198_v17 = vld [vmem:[%s5260_s25 + $0x28] sm:$0xff]  }
 0xdef   :  { %3894 = vmatpush3.bf16.msra.mxu1 %v1936_v16  ;;  %v4197_v16 = vld [vmem:[%s5260_s25 + $0x20] sm:$0xff]  }
 0xdf0   :  { %3895 = vmatprep.subr.bf16.mxu1 %v4424_v1 }
 0xdf2   :  { %v1928_v18 = vpop.f32.mrb[104].mxu0 }
 0xdf3   :  { %v3889_v0 = vpop.f32.mrb[105].mxu0 }
 0xdf4   :  { %v1931_v19 = vpop.f32.mrb[106].mxu0  ;;  %v4200_v0 = vld [vmem:[%s5257_s5 + $0x48] sm:$0xff]  }
 0xdf5   :  { %v1937_v20 = vpack.c.bf16 %v1931_v19, %v1928_v18  ;;  %v3890_v21 = vpop.f32.mrb[107].mxu0  ;;  %v4199_v18 = vld [vmem:[%s5257_s5 + $0x40] sm:$0xff]   ;;  %v4201_v19 = vld [vmem:[%s5257_s5 + $0x50] sm:$0xff]  }
 0xdf6   :  { %v3304_v21 = vld [vmem:[%s5261_s29 + $0x1] ss:$0 sm:$0xff] }
 0xdf7   :  { %3896 = vmatpush3.bf16.msra.mxu1 %v1937_v20  ;;  %v4202_v20 = vld [vmem:[%s5257_s5 + $0x58] sm:$0xff]  }
 0xdf8   :  { %3929 = vmatprep.subr.bf16.mxu1 %v4424_v1 }
 0xdfa   :  { %3898 = vmatmul.mubr.msk.bf16.vlgmr.msra.gmra.mrb[96].mxu1 %vm242_vm2, %v4189_v22 }
 0xdfb   :  { %3901 = vmatprep.mubr.msk.bf16.mxu1 %vm4425_vm0, %v4424_v1 }
 0xe02   :  { %3902 = vmatmul.mubr.msk.bf16.gmra.mrb[100].mxu1 %vm242_vm2, %v4190_v23 }
 0xe03   :  { %3905 = vmatprep.mubr.msk.bf16.mxu1 %vm4425_vm0, %v4424_v1 }
 0xe0a   :  { %3906 = vmatmul.mubr.msk.bf16.gmra.mrb[104].mxu1 %vm242_vm2, %v4191_v24 }
 0xe0b   :  { %3935 = vmatprep.mubr.msk.bf16.mxu1 %vm4425_vm0, %v4424_v1 }
 0xecd   :  { %v2002_v31 = vpop.f32.mrb[96].mxu1 }
 0xece   :  { %v2003_v33 = vadd.f32 %v3275_v28, %v2002_v31  ;;  %v3899_v34 = vpop.f32.mrb[97].mxu1 }
 0xecf   :  { %v2005_v48 = vpop.f32.mrb[98].mxu1 }
 0xed0   :  { %v2006_v39 = vadd.f32 %v3275_v28, %v2005_v48  ;;  %v3900_v35 = vpop.f32.mrb[99].mxu1  ;;  %4323 = vtanh.f32 %v2003_v33 }
 0xed2   :  { %4325 = vtanh.f32 %v2006_v39 }
 0xed5   :  { %v2010_v43 = vpop.f32.mrb[100].mxu1 }
 0xed6   :  { %v2011_v29 = vadd.f32 %v3275_v28, %v2010_v43  ;;  %v3903_v44 = vpop.f32.mrb[101].mxu1 }
 0xed7   :  { %v2013_v36 = vpop.f32.mrb[102].mxu1 }
 0xed8   :  { %v2014_v30 = vadd.f32 %v3275_v28, %v2013_v36  ;;  %v3904_v37 = vpop.f32.mrb[103].mxu1  ;;  %4327 = vtanh.f32 %v2011_v29 }
 0xeda   :  { %4329 = vtanh.f32 %v2014_v30  ;;  %v4324_v38 = vpop.eup %4323 }
 0xedc   :  { %v4326_v40 = vpop.eup %4325 }
 0xedd   :  { %v2049_v41 = vpack.c.bf16 %v4326_v40, %v4324_v38  ;;  %v2018_v42 = vpop.f32.mrb[104].mxu1 }
 0xede   :  { %v2019_v57 = vadd.f32 %v3275_v28, %v2018_v42  ;;  %v3907_v32 = vpop.f32.mrb[105].mxu1 }
 0xedf   :  { %v2021_v45 = vpop.f32.mrb[106].mxu1  ;;  %3918 = vmatmul.mubr.msk.bf16.vlgmr.msra.gmra.mrb[108].mxu0 %vm357_vm3, %v2049_v41 }
 0xee0   :  { %v2022_v46 = vadd.f32 %v3275_v28, %v2021_v45  ;;  %v3908_v49 = vpop.f32.mrb[107].mxu1  ;;  %3921 = vmatprep.mubr.msk.bf16.mxu0 %vm4425_vm0, %v4424_v1  ;;  %4331 = vtanh.f32 %v2019_v57  ;;  %3948 = vmatpush3.bf16.msra.mxu0 %v4199_v18 }
 0xee1   :  { %3949 = vmatprep.subr.bf16.mxu0 %v4424_v1 }
 0xee2   :  { %4333 = vtanh.f32 %v2022_v46  ;;  %v4328_v59 = vpop.eup %4327 }
 0xee4   :  { %v4330_v50 = vpop.eup %4329  ;;  %3950 = vmatpush3.bf16.msra.mxu0 %v4200_v0 }
 0xee5   :  { %v2050_v60 = vpack.c.bf16 %v4330_v50, %v4328_v59  ;;  %3951 = vmatprep.subr.bf16.mxu0 %v4424_v1 }
 0xee7   :  { %3922 = vmatmul.mubr.msk.bf16.gmra.mrb[112].mxu0 %vm357_vm3, %v2050_v60 }
 0xee8   :  { %3925 = vmatprep.mubr.msk.bf16.mxu0 %vm4425_vm0, %v4424_v1  ;;  %3952 = vmatpush3.bf16.msra.mxu0 %v4201_v19 }
 0xee9   :  { %3953 = vmatprep.subr.bf16.mxu0 %v4424_v1 }
 0xeea   :  { %v4332_v51 = vpop.eup %4331 }
 0xeec   :  { %v4334_v54 = vpop.eup %4333  ;;  %3954 = vmatpush3.bf16.msra.mxu0 %v4202_v20 }
 0xeed   :  { %v2051_v55 = vpack.c.bf16 %v4334_v54, %v4332_v51  ;;  %3985 = vmatprep.subr.bf16.mxu0 %v4424_v1 }
 0xeef   :  { %3926 = vmatmul.mubr.msk.bf16.gmra.mrb[116].mxu0 %vm357_vm3, %v2051_v55 }
 0xef0   :  { %3955 = vmatprep.mubr.msk.bf16.mxu0 %vm4425_vm0, %v4424_v1 }
 0xfb2   :  { %v2119_v58 = vpop.f32.mrb[108].mxu0 }
 0xfb3   :  { %v3919_v61 = vpop.f32.mrb[109].mxu0 }
 0xfb4   :  { %v2122_v62 = vpop.f32.mrb[110].mxu0 }
 0xfb5   :  { %v2142_v2 = vpack.c.bf16 %v2122_v62, %v2119_v58  ;;  %v3920_v47 = vpop.f32.mrb[111].mxu0 }
 0xfb7   :  { %3930 = vmatpush3.bf16.msra.mxu1 %v2142_v2 }
 0xfb8   :  { %3931 = vmatprep.subr.bf16.mxu1 %v4424_v1 }
 0xfba   :  { %v2127_v56 = vpop.f32.mrb[112].mxu0 }
 0xfbb   :  { %v3923_v7 = vpop.f32.mrb[113].mxu0 }
 0xfbc   :  { %v2130_v8 = vpop.f32.mrb[114].mxu0 }
 0xfbd   :  { %v2143_v9 = vpack.c.bf16 %v2130_v8, %v2127_v56  ;;  %v3924_v10 = vpop.f32.mrb[115].mxu0 }
 0xfbe   :  { %v4203_v10 = vld [vmem:[%s5260_s25 + $0x30] sm:$0xff]  }
 0xfbf   :  { %3932 = vmatpush3.bf16.msra.mxu1 %v2143_v9 }
 0xfc0   :  { %3933 = vmatprep.subr.bf16.mxu1 %v4424_v1 }
 0xfc2   :  { %v2135_v11 = vpop.f32.mrb[116].mxu0 }
 0xfc3   :  { %v3927_v12 = vpop.f32.mrb[117].mxu0 }
 0xfc4   :  { %v2138_v13 = vpop.f32.mrb[118].mxu0  ;;  %v4205_v12 = vld [vmem:[%s5260_s25 + $0x40] sm:$0xff]  }
 0xfc5   :  { %v2144_v63 = vpack.c.bf16 %v2138_v13, %v2135_v11  ;;  %v3928_v14 = vpop.f32.mrb[119].mxu0  ;;  %v4204_v11 = vld [vmem:[%s5260_s25 + $0x38] sm:$0xff]   ;;  %v4207_v13 = vld [vmem:[%s5257_s5 + $0x68] sm:$0xff]  }
 0xfc6   :  { %v4209_v14 = vld [vmem:[%s5257_s5 + $0x78] sm:$0xff]  }
 0xfc7   :  { %3934 = vmatpush3.bf16.msra.mxu1 %v2144_v63  ;;  %v4208_v63 = vld [vmem:[%s5257_s5 + $0x70] sm:$0xff]  }
 0xfc8   :  { %3967 = vmatprep.subr.bf16.mxu1 %v4424_v1 }
 0xfca   :  { %3936 = vmatmul.mubr.msk.bf16.vlgmr.msra.gmra.mrb[108].mxu1 %vm242_vm2, %v4196_v15  ;;  %v3333_v15 = vld [vmem:[%s5261_s29 + $0x2] ss:$0 sm:$0xff] }
 0xfcb   :  { %3939 = vmatprep.mubr.msk.bf16.mxu1 %vm4425_vm0, %v4424_v1 }
 0xfd2   :  { %3940 = vmatmul.mubr.msk.bf16.gmra.mrb[112].mxu1 %vm242_vm2, %v4197_v16 }
 0xfd3   :  { %3943 = vmatprep.mubr.msk.bf16.mxu1 %vm4425_vm0, %v4424_v1 }
 0xfda   :  { %3944 = vmatmul.mubr.msk.bf16.gmra.mrb[116].mxu1 %vm242_vm2, %v4198_v17 }
 0xfdb   :  { %3973 = vmatprep.mubr.msk.bf16.mxu1 %vm4425_vm0, %v4424_v1 }
0x109d   :  { %v2209_v22 = vpop.f32.mrb[108].mxu1 }
0x109e   :  { %v2210_v23 = vadd.f32 %v3304_v21, %v2209_v22  ;;  %v3937_v24 = vpop.f32.mrb[109].mxu1 }
0x109f   :  { %v2212_v25 = vpop.f32.mrb[110].mxu1 }
0x10a0   :  { %4335 = vtanh.f32 %v2210_v23  ;;  %v2213_v26 = vadd.f32 %v3304_v21, %v2212_v25  ;;  %v3938_v27 = vpop.f32.mrb[111].mxu1 }
0x10a2   :  { %4337 = vtanh.f32 %v2213_v26 }
0x10a5   :  { %v2217_v28 = vpop.f32.mrb[112].mxu1 }
0x10a6   :  { %v2218_v31 = vadd.f32 %v3304_v21, %v2217_v28  ;;  %v3941_v33 = vpop.f32.mrb[113].mxu1 }
0x10a7   :  { %v2220_v34 = vpop.f32.mrb[114].mxu1 }
0x10a8   :  { %4339 = vtanh.f32 %v2218_v31  ;;  %v2221_v48 = vadd.f32 %v3304_v21, %v2220_v34  ;;  %v3942_v39 = vpop.f32.mrb[115].mxu1 }
0x10aa   :  { %v4336_v35 = vpop.eup %4335  ;;  %4341 = vtanh.f32 %v2221_v48 }
0x10ab   :  { %v5059_v29 = vadd.f32 %v4336_v35, %v4974_v52 }
0x10ac   :  { %v4338_v43 = vpop.eup %4337 }
0x10ad   :  { %v5062_v44 = vadd.f32 %v4338_v43, %v4976_v53  ;;  %v2225_v36 = vpop.f32.mrb[116].mxu1 }
0x10ae   :  { %v2226_v30 = vadd.f32 %v3304_v21, %v2225_v36  ;;  %v3945_v37 = vpop.f32.mrb[117].mxu1 }
0x10af   :  { %v2262_v38 = vpack.c.bf16 %v5062_v44, %v5059_v29  ;;  %v2228_v40 = vpop.f32.mrb[118].mxu1 }
0x10b0   :  { %4343 = vtanh.f32 %v2226_v30  ;;  %v2229_v41 = vadd.f32 %v3304_v21, %v2228_v40  ;;  %v3946_v42 = vpop.f32.mrb[119].mxu1 }
0x10b1   :  { %3956 = vmatmul.mubr.msk.bf16.vlgmr.msra.gmra.mrb[120].mxu0 %vm357_vm3, %v2262_v38 }
0x10b2   :  { %v4340_v57 = vpop.eup %4339  ;;  %4345 = vtanh.f32 %v2229_v41  ;;  %3959 = vmatprep.mubr.msk.bf16.mxu0 %vm4425_vm0, %v4424_v1 }
0x10b3   :  { %v5070_v53 = vadd.f32 %v4340_v57, %v4983_v3 }
0x10b4   :  { %v4342_v52 = vpop.eup %4341 }
0x10b5   :  { %v5073_v32 = vadd.f32 %v4342_v52, %v4985_v4  ;;  %v4206_v4 = vld [vmem:[%s5257_s5 + $0x60] sm:$0xff]  }
0x10b6   :  { %3986 = vmatpush3.bf16.msra.mxu0 %v4206_v4 }
0x10b7   :  { %v2263_v45 = vpack.c.bf16 %v5073_v32, %v5070_v53  ;;  %3987 = vmatprep.subr.bf16.mxu0 %v4424_v1 }
0x10b9   :  { %3960 = vmatmul.mubr.msk.bf16.gmra.mrb[124].mxu0 %vm357_vm3, %v2263_v45 }
0x10ba   :  { %v4344_v46 = vpop.eup %4343  ;;  %3963 = vmatprep.mubr.msk.bf16.mxu0 %vm4425_vm0, %v4424_v1  ;;  %3988 = vmatpush3.bf16.msra.mxu0 %v4207_v13 }
0x10bb   :  { %v5081_v59 = vadd.f32 %v4344_v46, %v4992_v5  ;;  %3989 = vmatprep.subr.bf16.mxu0 %v4424_v1 }
0x10bc   :  { %v4346_v49 = vpop.eup %4345 }
0x10bd   :  { %v5084_v50 = vadd.f32 %v4346_v49, %v4994_v6 }
0x10be   :  { %3990 = vmatpush3.bf16.msra.mxu0 %v4208_v63 }
0x10bf   :  { %v2264_v3 = vpack.c.bf16 %v5084_v50, %v5081_v59  ;;  %3991 = vmatprep.subr.bf16.mxu0 %v4424_v1 }
0x10c1   :  { %3964 = vmatmul.mubr.msk.bf16.gmra.mrb[128].mxu0 %vm357_vm3, %v2264_v3 }
0x10c2   :  { %3993 = vmatprep.mubr.msk.bf16.mxu0 %vm4425_vm0, %v4424_v1  ;;  %3992 = vmatpush3.bf16.msra.mxu0 %v4209_v14 }
0x10c3   :  { %4023 = vmatprep.subr.bf16.mxu0 %v4424_v1 }
0x1184   :  { %v2332_v60 = vpop.f32.mrb[120].mxu0 }
0x1185   :  { %v3957_v51 = vpop.f32.mrb[121].mxu0 }
0x1186   :  { %v2335_v54 = vpop.f32.mrb[122].mxu0 }
0x1187   :  { %v2355_v5 = vpack.c.bf16 %v2335_v54, %v2332_v60  ;;  %v3958_v55 = vpop.f32.mrb[123].mxu0 }
0x1189   :  { %3968 = vmatpush3.bf16.msra.mxu1 %v2355_v5 }
0x118a   :  { %3969 = vmatprep.subr.bf16.mxu1 %v4424_v1 }
0x118c   :  { %v2340_v6 = vpop.f32.mrb[124].mxu0 }
0x118d   :  { %v3961_v58 = vpop.f32.mrb[125].mxu0 }
0x118e   :  { %v2343_v61 = vpop.f32.mrb[126].mxu0 }
0x118f   :  { %v2356_v62 = vpack.c.bf16 %v2343_v61, %v2340_v6  ;;  %v3962_v2 = vpop.f32.mrb[127].mxu0  ;;  %v4210_v61 = vld [vmem:[%s5260_s25 + $0x48] sm:$0xff]  }
0x1190   :  { %v4212_v2 = vld [vmem:[%s5260_s25 + $0x58] sm:$0xff]  }
0x1191   :  { %3970 = vmatpush3.bf16.msra.mxu1 %v2356_v62  ;;  %v4211_v62 = vld [vmem:[%s5260_s25 + $0x50] sm:$0xff]  }
0x1192   :  { %3971 = vmatprep.subr.bf16.mxu1 %v4424_v1 }
0x1194   :  { %v2348_v47 = vpop.f32.mrb[128].mxu0 }
0x1195   :  { %v3965_v56 = vpop.f32.mrb[129].mxu0 }
0x1196   :  { %v2351_v7 = vpop.f32.mrb[130].mxu0  ;;  %v4214_v56 = vld [vmem:[%s5262_s3 + $0x8] sm:$0xff]  }
0x1197   :  { %v2357_v8 = vpack.c.bf16 %v2351_v7, %v2348_v47  ;;  %v3966_v9 = vpop.f32.mrb[131].mxu0  ;;  %v4213_v47 = vld [vmem:[%s5262_s3] sm:$0xff]   ;;  %v4215_v7 = vld [vmem:[%s5262_s3 + $0x10] sm:$0xff]  }
0x1198   :  { %v3362_v9 = vld [vmem:[%s5261_s29 + $0x3] ss:$0 sm:$0xff] }
0x1199   :  { %3972 = vmatpush3.bf16.msra.mxu1 %v2357_v8  ;;  %v4216_v8 = vld [vmem:[%s5262_s3 + $0x18] sm:$0xff]  }
0x119a   :  { %4005 = vmatprep.subr.bf16.mxu1 %v4424_v1 }
0x119c   :  { %3974 = vmatmul.mubr.msk.bf16.vlgmr.msra.gmra.mrb[120].mxu1 %vm242_vm2, %v4203_v10 }
0x119d   :  { %3977 = vmatprep.mubr.msk.bf16.mxu1 %vm4425_vm0, %v4424_v1 }
0x11a4   :  { %3978 = vmatmul.mubr.msk.bf16.gmra.mrb[124].mxu1 %vm242_vm2, %v4204_v11 }
0x11a5   :  { %3981 = vmatprep.mubr.msk.bf16.mxu1 %vm4425_vm0, %v4424_v1 }
0x11ac   :  { %3982 = vmatmul.mubr.msk.bf16.gmra.mrb[128].mxu1 %vm242_vm2, %v4205_v12 }
0x11ad   :  { %4011 = vmatprep.mubr.msk.bf16.mxu1 %vm4425_vm0, %v4424_v1 }
0x126f   :  { %v2422_v16 = vpop.f32.mrb[120].mxu1 }
0x1270   :  { %v2423_v17 = vadd.f32 %v3333_v15, %v2422_v16  ;;  %v3975_v18 = vpop.f32.mrb[121].mxu1 }
0x1271   :  { %v2425_v0 = vpop.f32.mrb[122].mxu1 }
0x1272   :  { %v2426_v19 = vadd.f32 %v3333_v15, %v2425_v0  ;;  %v3976_v20 = vpop.f32.mrb[123].mxu1  ;;  %4347 = vtanh.f32 %v2423_v17 }
0x1274   :  { %4349 = vtanh.f32 %v2426_v19 }
0x1277   :  { %v2430_v21 = vpop.f32.mrb[124].mxu1 }
0x1278   :  { %v2431_v22 = vadd.f32 %v3333_v15, %v2430_v21  ;;  %v3979_v23 = vpop.f32.mrb[125].mxu1 }
0x1279   :  { %v2433_v24 = vpop.f32.mrb[126].mxu1 }
0x127a   :  { %v2434_v25 = vadd.f32 %v3333_v15, %v2433_v24  ;;  %v3980_v26 = vpop.f32.mrb[127].mxu1  ;;  %4351 = vtanh.f32 %v2431_v22 }
0x127c   :  { %4353 = vtanh.f32 %v2434_v25  ;;  %v4348_v27 = vpop.eup %4347 }
0x127e   :  { %v4350_v28 = vpop.eup %4349 }
0x127f   :  { %v2469_v31 = vpack.c.bf16 %v4350_v28, %v4348_v27  ;;  %v2438_v33 = vpop.f32.mrb[128].mxu1  ;;  %v4217_v27 = vld [vmem:[%s5263_s8] sm:$0xff]  }
0x1280   :  { %v2439_v34 = vadd.f32 %v3333_v15, %v2438_v33  ;;  %v3983_v48 = vpop.f32.mrb[129].mxu1 }
0x1281   :  { %v2441_v39 = vpop.f32.mrb[130].mxu1  ;;  %3994 = vmatmul.mubr.msk.bf16.vlgmr.msra.gmra.mrb[132].mxu0 %vm357_vm3, %v2469_v31 }
0x1282   :  { %v2442_v35 = vadd.f32 %v3333_v15, %v2441_v39  ;;  %v3984_v43 = vpop.f32.mrb[131].mxu1  ;;  %3997 = vmatprep.mubr.msk.bf16.mxu0 %vm4425_vm0, %v4424_v1  ;;  %4355 = vtanh.f32 %v2439_v34  ;;  %4024 = vmatpush3.bf16.msra.mxu0 %v4213_v47  ;;  %v4222_v47 = vld [vmem:[%s5264_s14 + $0x8] sm:$0xff]  }
0x1283   :  { %4025 = vmatprep.subr.bf16.mxu0 %v4424_v1  ;;  %v4219_v43 = vld [vmem:[%s5263_s8 + $0x10] sm:$0xff]  }
0x1284   :  { %4357 = vtanh.f32 %v2442_v35  ;;  %v4352_v36 = vpop.eup %4351 }
0x1286   :  { %v4354_v30 = vpop.eup %4353  ;;  %4026 = vmatpush3.bf16.msra.mxu0 %v4214_v56 }
0x1287   :  { %v2470_v37 = vpack.c.bf16 %v4354_v30, %v4352_v36  ;;  %4027 = vmatprep.subr.bf16.mxu0 %v4424_v1 }
0x1289   :  { %3998 = vmatmul.mubr.msk.bf16.gmra.mrb[136].mxu0 %vm357_vm3, %v2470_v37  ;;  %v4220_v37 = vld [vmem:[%s5263_s8 + $0x18] sm:$0xff]  }
0x128a   :  { %4001 = vmatprep.mubr.msk.bf16.mxu0 %vm4425_vm0, %v4424_v1  ;;  %4028 = vmatpush3.bf16.msra.mxu0 %v4215_v7 }
0x128b   :  { %4029 = vmatprep.subr.bf16.mxu0 %v4424_v1 }
0x128c   :  { %v4356_v38 = vpop.eup %4355 }
0x128e   :  { %v4358_v40 = vpop.eup %4357  ;;  %4030 = vmatpush3.bf16.msra.mxu0 %v4216_v8 }
0x128f   :  { %v2471_v41 = vpack.c.bf16 %v4358_v40, %v4356_v38  ;;  %4061 = vmatprep.subr.bf16.mxu0 %v4424_v1 }
0x1291   :  { %4002 = vmatmul.mubr.msk.bf16.gmra.mrb[140].mxu0 %vm357_vm3, %v2471_v41 }
0x1292   :  { %4031 = vmatprep.mubr.msk.bf16.mxu0 %vm4425_vm0, %v4424_v1 }
0x1354   :  { %v2539_v42 = vpop.f32.mrb[132].mxu0 }
0x1355   :  { %v3995_v57 = vpop.f32.mrb[133].mxu0 }
0x1356   :  { %v2542_v52 = vpop.f32.mrb[134].mxu0 }
0x1357   :  { %v2562_v45 = vpack.c.bf16 %v2542_v52, %v2539_v42  ;;  %v3996_v46 = vpop.f32.mrb[135].mxu0 }
0x1359   :  { %4006 = vmatpush3.bf16.msra.mxu1 %v2562_v45 }
0x135a   :  { %4007 = vmatprep.subr.bf16.mxu1 %v4424_v1 }
0x135c   :  { %v2547_v49 = vpop.f32.mrb[136].mxu0 }
0x135d   :  { %v3999_v3 = vpop.f32.mrb[137].mxu0 }
0x135e   :  { %v2550_v4 = vpop.f32.mrb[138].mxu0 }
0x135f   :  { %v2563_v60 = vpack.c.bf16 %v2550_v4, %v2547_v49  ;;  %v4000_v51 = vpop.f32.mrb[139].mxu0 }
0x1361   :  { %4008 = vmatpush3.bf16.msra.mxu1 %v2563_v60 }
0x1362   :  { %4009 = vmatprep.subr.bf16.mxu1 %v4424_v1 }
0x1364   :  { %v2555_v54 = vpop.f32.mrb[140].mxu0 }
0x1365   :  { %v4003_v5 = vpop.f32.mrb[141].mxu0 }
0x1366   :  { %v2558_v55 = vpop.f32.mrb[142].mxu0 }
0x1367   :  { %v2564_v6 = vpack.c.bf16 %v2558_v55, %v2555_v54  ;;  %v4004_v58 = vpop.f32.mrb[143].mxu0  ;;  %v4221_v55 = vld [vmem:[%s5264_s14] sm:$0xff]  }
0x1369   :  { %4010 = vmatpush3.bf16.msra.mxu1 %v2564_v6 }
0x136a   :  { %4043 = vmatprep.subr.bf16.mxu1 %v4424_v1 }
0x136c   :  { %4012 = vmatmul.mubr.msk.bf16.vlgmr.msra.gmra.mrb[132].mxu1 %vm242_vm2, %v4210_v61 }
0x136d   :  { %4015 = vmatprep.mubr.msk.bf16.mxu1 %vm4425_vm0, %v4424_v1 }
0x1374   :  { %4016 = vmatmul.mubr.msk.bf16.gmra.mrb[136].mxu1 %vm242_vm2, %v4211_v62 }
0x1375   :  { %4019 = vmatprep.mubr.msk.bf16.mxu1 %vm4425_vm0, %v4424_v1 }
0x137c   :  { %4020 = vmatmul.mubr.msk.bf16.gmra.mrb[140].mxu1 %vm242_vm2, %v4212_v2 }
0x137d   :  { %4049 = vmatprep.mubr.msk.bf16.mxu1 %vm4425_vm0, %v4424_v1 }
0x143f   :  { %v2629_v10 = vpop.f32.mrb[132].mxu1 }
0x1440   :  { %v2630_v11 = vadd.f32 %v3362_v9, %v2629_v10  ;;  %v4013_v12 = vpop.f32.mrb[133].mxu1 }
0x1441   :  { %v2632_v13 = vpop.f32.mrb[134].mxu1 }
0x1442   :  { %4359 = vtanh.f32 %v2630_v11  ;;  %v2633_v63 = vadd.f32 %v3362_v9, %v2632_v13  ;;  %v4014_v14 = vpop.f32.mrb[135].mxu1  ;;  %v4223_v11 = vld [vmem:[%s5264_s14 + $0x10] sm:$0xff]  }
0x1444   :  { %4361 = vtanh.f32 %v2633_v63 }
0x1447   :  { %v2637_v15 = vpop.f32.mrb[136].mxu1 }
0x1448   :  { %v2638_v16 = vadd.f32 %v3362_v9, %v2637_v15  ;;  %v4017_v17 = vpop.f32.mrb[137].mxu1 }
0x1449   :  { %v2640_v18 = vpop.f32.mrb[138].mxu1  ;;  %v4225_v17 = vld [vmem:[%s5265_s19 + $0x8] sm:$0xff]  }
0x144a   :  { %4363 = vtanh.f32 %v2638_v16  ;;  %v2641_v0 = vadd.f32 %v3362_v9, %v2640_v18  ;;  %v4018_v19 = vpop.f32.mrb[139].mxu1  ;;  %v4224_v16 = vld [vmem:[%s5265_s19] sm:$0xff]   ;;  %v4226_v18 = vld [vmem:[%s5265_s19 + $0x10] sm:$0xff]  }
0x144c   :  { %v4360_v20 = vpop.eup %4359  ;;  %4365 = vtanh.f32 %v2641_v0 }
0x144d   :  { %v2658_v22 = vadd.f32 %v4360_v20, %v5059_v29  ;;  %v4218_v29 = vld [vmem:[%s5263_s8 + $0x8] sm:$0xff]  }
0x144e   :  { %v4362_v21 = vpop.eup %4361 }
0x144f   :  { %v2659_v23 = vadd.f32 %v4362_v21, %v5062_v44  ;;  %v2645_v24 = vpop.f32.mrb[140].mxu1 }
0x1450   :  { %v2646_v25 = vadd.f32 %v3362_v9, %v2645_v24  ;;  %v4021_v26 = vpop.f32.mrb[141].mxu1 }
0x1451   :  { %v2679_v28 = vpack.c.bf16 %v2659_v23, %v2658_v22  ;;  %v2648_v31 = vpop.f32.mrb[142].mxu1 }
0x1452   :  { %4367 = vtanh.f32 %v2646_v25  ;;  %v2649_v33 = vadd.f32 %v3362_v9, %v2648_v31  ;;  %v4022_v34 = vpop.f32.mrb[143].mxu1 }
0x1453   :  { %4032 = vmatmul.mubr.msk.bf16.vlgmr.msra.gmra.mrb[144].mxu0 %vm357_vm3, %v2679_v28 }
0x1454   :  { %v4364_v48 = vpop.eup %4363  ;;  %4369 = vtanh.f32 %v2649_v33  ;;  %4062 = vmatpush3.bf16.msra.mxu0 %v4217_v27  ;;  %4035 = vmatprep.mubr.msk.bf16.mxu0 %vm4425_vm0, %v4424_v1 }
0x1455   :  { %4063 = vmatprep.subr.bf16.mxu0 %v4424_v1  ;;  %v2660_v39 = vadd.f32 %v4364_v48, %v5070_v53 }
0x1456   :  { %v4366_v44 = vpop.eup %4365 }
0x1457   :  { %v2661_v35 = vadd.f32 %v4366_v44, %v5073_v32 }
0x1458   :  { %4064 = vmatpush3.bf16.msra.mxu0 %v4218_v29 }
0x1459   :  { %v2680_v36 = vpack.c.bf16 %v2661_v35, %v2660_v39  ;;  %4065 = vmatprep.subr.bf16.mxu0 %v4424_v1 }
0x145b   :  { %4036 = vmatmul.mubr.msk.bf16.gmra.mrb[148].mxu0 %vm357_vm3, %v2680_v36 }
0x145c   :  { %v4368_v30 = vpop.eup %4367  ;;  %4039 = vmatprep.mubr.msk.bf16.mxu0 %vm4425_vm0, %v4424_v1  ;;  %4066 = vmatpush3.bf16.msra.mxu0 %v4219_v43 }
0x145d   :  { %4067 = vmatprep.subr.bf16.mxu0 %v4424_v1  ;;  %v2662_v53 = vadd.f32 %v4368_v30, %v5081_v59 }
0x145e   :  { %v4370_v38 = vpop.eup %4369 }
0x145f   :  { %v2663_v32 = vadd.f32 %v4370_v38, %v5084_v50 }
0x1460   :  { %4068 = vmatpush3.bf16.msra.mxu0 %v4220_v37 }
0x1461   :  { %v2681_v40 = vpack.c.bf16 %v2663_v32, %v2662_v53 }
0x1463   :  { %4040 = vmatmul.mubr.msk.bf16.gmra.mrb[152].mxu0 %vm357_vm3, %v2681_v40 }
0x1464   :  { %4069 = vmatprep.mubr.msk.bf16.mxu0 %vm4425_vm0, %v4424_v1 }
0x146b   :  { %4070 = vmatmul.mubr.msk.bf16.vlgmr.msra.gmra.mrb[156].mxu0 %vm357_vm3, %v2679_v28 }
0x146c   :  { %4073 = vmatprep.mubr.msk.bf16.mxu0 %vm4425_vm0, %v4424_v1 }
0x1473   :  { %4074 = vmatmul.mubr.msk.bf16.gmra.mrb[160].mxu0 %vm357_vm3, %v2680_v36 }
0x1474   :  { %4077 = vmatprep.mubr.msk.bf16.mxu0 %vm4425_vm0, %v4424_v1 }
0x147b   :  { %4078 = vmatmul.mubr.msk.bf16.gmra.mrb[164].mxu0 %vm357_vm3, %v2681_v40 }
0x1526   :  { %v2749_v59 = vpop.f32.mrb[144].mxu0 }
0x1527   :  { %v4033_v50 = vpop.f32.mrb[145].mxu0 }
0x1528   :  { %v2752_v41 = vpop.f32.mrb[146].mxu0 }
0x1529   :  { %v2772_v42 = vpack.c.bf16 %v2752_v41, %v2749_v59  ;;  %v4034_v57 = vpop.f32.mrb[147].mxu0 }
0x152b   :  { %4044 = vmatpush3.bf16.msra.mxu1 %v2772_v42 }
0x152c   :  { %4045 = vmatprep.subr.bf16.mxu1 %v4424_v1 }
0x152e   :  { %v2757_v52 = vpop.f32.mrb[148].mxu0 }
0x152f   :  { %v4037_v45 = vpop.f32.mrb[149].mxu0 }
0x1530   :  { %v2760_v46 = vpop.f32.mrb[150].mxu0 }
0x1531   :  { %v2773_v49 = vpack.c.bf16 %v2760_v46, %v2757_v52  ;;  %v4038_v3 = vpop.f32.mrb[151].mxu0 }
0x1533   :  { %4046 = vmatpush3.bf16.msra.mxu1 %v2773_v49 }
0x1534   :  { %4047 = vmatprep.subr.bf16.mxu1 %v4424_v1 }
0x1536   :  { %v2765_v4 = vpop.f32.mrb[152].mxu0 }
0x1537   :  { %v4041_v60 = vpop.f32.mrb[153].mxu0 }
0x1538   :  { %v2768_v51 = vpop.f32.mrb[154].mxu0 }
0x1539   :  { %v2774_v54 = vpack.c.bf16 %v2768_v51, %v2765_v4  ;;  %v4042_v5 = vpop.f32.mrb[155].mxu0 }
0x153b   :  { %4048 = vmatpush3.bf16.msra.mxu1 %v2774_v54 }
0x153c   :  { %4081 = vmatprep.subr.bf16.mxu1 %v4424_v1 }
0x153e   :  { %v2935_v6 = vpop.f32.mrb[156].mxu0  ;;  %4050 = vmatmul.mubr.msk.bf16.vlgmr.msra.gmra.mrb[144].mxu1 %vm242_vm2, %v4221_v55 }
0x153f   :  { %v4071_v58 = vpop.f32.mrb[157].mxu0  ;;  %4053 = vmatprep.mubr.msk.bf16.mxu1 %vm4425_vm0, %v4424_v1 }
0x1540   :  { %v2938_v61 = vpop.f32.mrb[158].mxu0 }
0x1541   :  { %v2958_v62 = vpack.c.bf16 %v2938_v61, %v2935_v6  ;;  %v4072_v2 = vpop.f32.mrb[159].mxu0 }
0x1543   :  { %4082 = vmatpush3.bf16.msra.mxu1 %v2958_v62 }
0x1544   :  { %4083 = vmatprep.subr.bf16.mxu1 %v4424_v1 }
0x1546   :  { %v2943_v56 = vpop.f32.mrb[160].mxu0  ;;  %4054 = vmatmul.mubr.msk.bf16.gmra.mrb[148].mxu1 %vm242_vm2, %v4222_v47 }
0x1547   :  { %v4075_v7 = vpop.f32.mrb[161].mxu0  ;;  %4057 = vmatprep.mubr.msk.bf16.mxu1 %vm4425_vm0, %v4424_v1 }
0x1548   :  { %v2946_v8 = vpop.f32.mrb[162].mxu0 }
0x1549   :  { %v2959_v9 = vpack.c.bf16 %v2946_v8, %v2943_v56  ;;  %v4076_v10 = vpop.f32.mrb[163].mxu0 }
0x154b   :  { %4084 = vmatpush3.bf16.msra.mxu1 %v2959_v9 }
0x154c   :  { %4085 = vmatprep.subr.bf16.mxu1 %v4424_v1 }
0x154e   :  { %v2951_v12 = vpop.f32.mrb[164].mxu0  ;;  %4058 = vmatmul.mubr.msk.bf16.gmra.mrb[152].mxu1 %vm242_vm2, %v4223_v11 }
0x154f   :  { %v4079_v13 = vpop.f32.mrb[165].mxu0  ;;  %4087 = vmatprep.mubr.msk.bf16.mxu1 %vm4425_vm0, %v4424_v1 }
0x1550   :  { %v2954_v63 = vpop.f32.mrb[166].mxu0 }
0x1551   :  { %v2960_v14 = vpack.c.bf16 %v2954_v63, %v2951_v12  ;;  %v4080_v15 = vpop.f32.mrb[167].mxu0 }
0x1553   :  { %4086 = vmatpush3.bf16.msra.mxu1 %v2960_v14 }
0x1556   :  { %4088 = vmatmul.mubr.msk.bf16.vlgmr.msra.gmra.mrb[156].mxu1 %vm242_vm2, %v4224_v16 }
0x1557   :  { %4091 = vmatprep.mubr.msk.bf16.mxu1 %vm4425_vm0, %v4424_v1 }
0x155e   :  { %4092 = vmatmul.mubr.msk.bf16.gmra.mrb[160].mxu1 %vm242_vm2, %v4225_v17 }
0x155f   :  { %4095 = vmatprep.mubr.msk.bf16.mxu1 %vm4425_vm0, %v4424_v1 }
0x1566   :  { %4096 = vmatmul.mubr.msk.bf16.gmra.mrb[164].mxu1 %vm242_vm2, %v4226_v18 }
0x1567   :  { %4382 = shalt.err (!%p4379_p4)
}
0x1568   :  { %s4383_s7 = scalar_lea.hbm %s4580_s4, 16 }
0x1569   :  { %p4384_p5 = scmp.ne.s32.totalorder %s4580_s4, %s4383_s7  ;;  %p4387_p6 = scmp.lt.u32.totalorder %s4383_s7, %s4580_s4 }
0x156b   :  { %p4389_p7 = pnand %p4387_p6, %p4384_p5 }
0x156d   :  { %4392 = shalt.err (!%p4389_p7)
}
0x156e   :  { %s5266_s10 = sld [smem:[#allocation13_spill]]  ;;  %s5267_s11 = sld [smem:[#allocation16_spill]] }
0x156f   :  { %3075 = dma.vmem_to_hbm [thread:$0]  %s3073_s30, 16, %s4580_s4, [#allocation3]  }
0x1574   :  { %v3376_v1 = vld [vmem:[%s5266_s10] ss:$0 sm:$0xff] }
0x1575   :  { %v3390_v35 = vld [vmem:[%s5267_s11] ss:$0 sm:$0xff] }
0x1611   :  { %v2839_v0 = vpop.f32.mrb[144].mxu1 }
0x1612   :  { %v2840_v19 = vadd.f32 %v3376_v1, %v2839_v0  ;;  %v4051_v20 = vpop.f32.mrb[145].mxu1 }
0x1613   :  { %v2842_v21 = vpop.f32.mrb[146].mxu1 }
0x1614   :  { %3048 = vst.msk [vmem:[%s4570_s20] sm:$0xff] %vm151_vm1, %v2840_v19  ;;  %v2843_v22 = vadd.f32 %v3376_v1, %v2842_v21  ;;  %v4052_v23 = vpop.f32.mrb[147].mxu1 }
0x1616   :  { %3049 = vst.msk [vmem:[%s4570_s20 + $0x8] sm:$0xff] %vm151_vm1, %v2843_v22 }
0x1619   :  { %v2847_v24 = vpop.f32.mrb[148].mxu1 }
0x161a   :  { %v2848_v25 = vadd.f32 %v3376_v1, %v2847_v24  ;;  %v4055_v26 = vpop.f32.mrb[149].mxu1 }
0x161b   :  { %v2850_v27 = vpop.f32.mrb[150].mxu1 }
0x161c   :  { %3050 = vst.msk [vmem:[%s4570_s20 + $0x10] sm:$0xff] %vm151_vm1, %v2848_v25  ;;  %v2851_v28 = vadd.f32 %v3376_v1, %v2850_v27  ;;  %v4056_v31 = vpop.f32.mrb[151].mxu1 }
0x161e   :  { %3051 = vst.msk [vmem:[%s4570_s20 + $0x18] sm:$0xff] %vm151_vm1, %v2851_v28 }
0x1621   :  { %v2855_v33 = vpop.f32.mrb[152].mxu1 }
0x1622   :  { %v2856_v34 = vadd.f32 %v3376_v1, %v2855_v33  ;;  %v4059_v48 = vpop.f32.mrb[153].mxu1 }
0x1623   :  { %v2858_v29 = vpop.f32.mrb[154].mxu1 }
0x1624   :  { %3052 = vst.msk [vmem:[%s4570_s20 + $0x20] sm:$0xff] %vm151_vm1, %v2856_v34  ;;  %v2859_v44 = vadd.f32 %v3376_v1, %v2858_v29  ;;  %v4060_v39 = vpop.f32.mrb[155].mxu1 }
0x1626   :  { %3053 = vst.msk [vmem:[%s4570_s20 + $0x28] sm:$0xff] %vm151_vm1, %v2859_v44 }
0x1629   :  { %v3025_v43 = vpop.f32.mrb[156].mxu1 }
0x162a   :  { %v3026_v36 = vadd.f32 %v3390_v35, %v3025_v43  ;;  %v4089_v30 = vpop.f32.mrb[157].mxu1 }
0x162b   :  { %v3028_v37 = vpop.f32.mrb[158].mxu1 }
0x162c   :  { %3054 = vst.msk [vmem:[%s4575_s27] sm:$0xff] %vm151_vm1, %v3026_v36  ;;  %v3029_v38 = vadd.f32 %v3390_v35, %v3028_v37  ;;  %v4090_v53 = vpop.f32.mrb[159].mxu1 }
0x162e   :  { %3055 = vst.msk [vmem:[%s4575_s27 + $0x8] sm:$0xff] %vm151_vm1, %v3029_v38 }
0x1631   :  { %v3033_v32 = vpop.f32.mrb[160].mxu1 }
0x1632   :  { %v3034_v40 = vadd.f32 %v3390_v35, %v3033_v32  ;;  %v4093_v59 = vpop.f32.mrb[161].mxu1 }
0x1633   :  { %v3036_v50 = vpop.f32.mrb[162].mxu1 }
0x1634   :  { %3056 = vst.msk [vmem:[%s4575_s27 + $0x10] sm:$0xff] %vm151_vm1, %v3034_v40  ;;  %v3037_v41 = vadd.f32 %v3390_v35, %v3036_v50  ;;  %v4094_v42 = vpop.f32.mrb[163].mxu1 }
0x1636   :  { %3057 = vst.msk [vmem:[%s4575_s27 + $0x18] sm:$0xff] %vm151_vm1, %v3037_v41 }
0x1639   :  { %v3041_v57 = vpop.f32.mrb[164].mxu1 }
0x163a   :  { %v3042_v52 = vadd.f32 %v3390_v35, %v3041_v57  ;;  %v4097_v45 = vpop.f32.mrb[165].mxu1 }
0x163b   :  { %v3044_v46 = vpop.f32.mrb[166].mxu1 }
0x163c   :  { %3058 = vst.msk [vmem:[%s4575_s27 + $0x20] sm:$0xff] %vm151_vm1, %v3042_v52  ;;  %v3045_v49 = vadd.f32 %v3390_v35, %v3044_v46  ;;  %v4098_v3 = vpop.f32.mrb[167].mxu1 }
0x163e   :  { %3059 = vst.msk [vmem:[%s4575_s27 + $0x28] sm:$0xff] %vm151_vm1, %v3045_v49 }
0x163f   :  { %4393 = dma.done.wait [#allocation3], 16  }
0x1640   :  { %4394 = vsyncadd [#allocation3], 4294967280 }
0x1641   :  { %3085 = vsyncpa [#allocation3], 1 }

</bundles_post_ra>
